<compile_context>
chip_gen: v6e
topology: v6e:2x2x1
jax: 0.10.0
libtpu: 0.0.40
codegen_flags: <defaults>
</compile_context>

<pallas_src>
import functools
import math

import jax
import jax.numpy as jnp
from jax.experimental import pallas as pl
from jax.experimental.pallas import tpu as pltpu


HIDDEN_DIM = 32


# ----------------------------------------------------------------------------- helpers


def _choose_tiling(M, pack, target):
    """Pick (tile_m_samples, padded_M).

    tile_m is a multiple of pack*8 so both the packed input block (tr, 128) and the
    packed output block are (8, 128)-aligned.  Prefer a divisor of M (no padding
    copy); only pad M when its factorization would force tiny tiles.
    """
    g = pack * 8
    target = max(g, (target // g) * g)
    Mp = ((M + g - 1) // g) * g           # minimal alignment padding
    t = min(target, Mp)
    t -= t % g
    while Mp % t:
        t -= g
    if t * 4 <= target and M > target:
        # Awkward factorization: pay one padding copy instead of running tiny tiles.
        Mp = ((M + target - 1) // target) * target
        t = target
    return t, Mp


def _vmem_limit_bytes(need_bytes):
    """Explicit scoped-VMEM limit: what we need (plus margin), capped below physical."""
    try:
        info = pltpu.get_tpu_info()
        cap = getattr(info, "vmem_capacity_bytes", None) or (64 << 20)
    except Exception:                      # CPU interpret / query unavailable
        cap = 64 << 20
    return int(min(max(need_bytes, 16 << 20), cap - (8 << 20)))


def _pack_params(params, n_planes, pack, o_pad):
    """Block-diagonal (packed-lane) weights with the 1/P plane mean folded into W1."""
    H = params["w1"].shape[0]
    O = params["w2"].shape[0]
    w1 = params["w1"].astype(jnp.float32) / jnp.float32(n_planes)       # (H, C)
    w2 = params["w2"].astype(jnp.float32)                               # (O, H)
    eye = jnp.eye(pack, dtype=jnp.float32)
    w1e = jnp.kron(eye, w1.T)                                           # (pack*C=128, pack*H)
    w2pad = jnp.zeros((H, o_pad), jnp.float32).at[:, :O].set(w2.T)      # (H, O_pad)
    w2e = jnp.kron(eye, w2pad)                                          # (pack*H, 128)
    b1e = jnp.tile(params["b1"].astype(jnp.float32), pack).reshape(1, pack * H)
    b2pad = jnp.zeros((o_pad,), jnp.float32).at[:O].set(params["b2"].astype(jnp.float32))
    b2e = jnp.tile(b2pad, pack).reshape(1, 128)
    return w1e, b1e, w2e, b2e


# ------------------------------------------------------------------------------ kernel


def _osg_decoder_kernel(x_ref, w1_ref, b1_ref, w2_ref, b2_ref, o_ref, *, chunk_rows):
    """One grid step: (P, TR, 128) packed features -> (TR, 128) packed outputs.

    Lane layout: within a packed row, sample k (of `pack` samples) owns lanes
    [k*C, (k+1)*C) of the input and [k*O_pad, (k+1)*O_pad) of the output; the
    block-diagonal weights keep every matmul lane-dense on the MXU.
    """
    n_planes = x_ref.shape[0]
    tr = o_ref.shape[0]
    n_chunks = tr // chunk_rows
    hp = jax.lax.Precision.HIGHEST

    b1 = b1_ref[...]            # (1, pack*H) -- hoisted out of the row loop
    b2 = b2_ref[...]            # (1, 128)

    def body(j, carry):
        r0 = pl.multiple_of(j * chunk_rows, chunk_rows)
        # Plane sum (the 1/P mean factor is folded into W1): lane-dense VPU adds.
        xs = x_ref[0, pl.ds(r0, chunk_rows), :].astype(jnp.float32)
        for p in range(1, n_planes):
            xs = xs + x_ref[p, pl.ds(r0, chunk_rows), :].astype(jnp.float32)
        # FC1 + Softplus + FC2, all in the packed (lane-dense) domain.  Weight loads
        # stay inside the loop body so their live ranges are bounded per iteration.
        h = jnp.dot(xs, w1_ref[...], precision=hp,
                    preferred_element_type=jnp.float32) + b1
        h = jnp.logaddexp(h, 0.0)                       # Softplus -> EUP slot
        y = jnp.dot(h, w2_ref[...], precision=hp,
                    preferred_element_type=jnp.float32) + b2
        o_ref[pl.ds(r0, chunk_rows), :] = y.astype(o_ref.dtype)
        return carry

    jax.lax.fori_loop(0, n_chunks, body, 0, unroll=min(2, n_chunks))


# ----------------------------------------------------------------------------- wrapper


def init_osg_decoder_params(key, n_features, decoder_output_dim, lr_multiplier=1.0):
    """EG3D FullyConnectedLayer init with the runtime gains folded in.

    weight ~ randn(out,in)/lr_mul, weight_gain = lr_mul/sqrt(in), bias = 0
    => effective weight = randn(out,in)/sqrt(in), bias = 0.
    """
    del lr_multiplier
    out_dim = 1 + decoder_output_dim
    k1, k2 = jax.random.split(key)
    w1 = (jax.random.normal(k1, (HIDDEN_DIM, n_features), jnp.float32)
          / jnp.sqrt(jnp.float32(n_features)))
    b1 = jnp.zeros((HIDDEN_DIM,), jnp.float32)
    w2 = (jax.random.normal(k2, (out_dim, HIDDEN_DIM), jnp.float32)
          / jnp.sqrt(jnp.float32(HIDDEN_DIM)))
    b2 = jnp.zeros((out_dim,), jnp.float32)
    return {"w1": w1, "b1": b1, "w2": w2, "b2": b2}


@functools.partial(jax.jit, static_argnames=("tile_m",))
def osg_decoder_forward(sampled_features, ray_directions, params, *, tile_m=16384):
    """sampled_features: (N, P, M, C) float32/bfloat16; ray_directions unused (parity)."""
    del ray_directions
    N, P, M, C = sampled_features.shape
    H = params["w1"].shape[0]
    O = params["w2"].shape[0]

    assert 128 % C == 0 and C <= 128, "feature dim must divide 128 for lane packing"
    # TODO(synk): general C (pad feature axis to a divisor of 128) if ever needed.
    pack = 128 // C
    o_pad = C                                      # output lanes reserved per sample
    assert O <= o_pad, "1 + decoder_output_dim must be <= n_features for this packing"

    tile, Mp = _choose_tiling(M, pack, tile_m)
    g = pack * 8
    # Keep at least 4 grid steps when the problem allows it: v7x has 2 TensorCores
    # (parallel grid axes shard across them) and the pipeline needs >=2 steps/core.
    while N * (Mp // tile) < 4 and tile % (2 * g) == 0:
        tile //= 2

    sf = sampled_features
    if Mp != M:
        sf = jnp.pad(sf, ((0, 0), (0, 0), (0, Mp - M), (0, 0)))
    packed = sf.reshape(N, P, Mp // pack, pack * C)        # free, contiguous reshape

    w1e, b1e, w2e, b2e = _pack_params(params, P, pack, o_pad)
    PH = pack * H

    tr = tile // pack                                      # packed rows per grid step
    chunk = math.gcd(tr, 128)                              # packed rows per inner step

    in_block = P * tr * 128 * packed.dtype.itemsize
    out_block = tr * 128 * 4
    w_bytes = (w1e.size + w2e.size + b1e.size + b2e.size) * 4
    vmem_limit = _vmem_limit_bytes(2 * (in_block + out_block) + 2 * w_bytes + (4 << 20))

    kernel = functools.partial(_osg_decoder_kernel, chunk_rows=chunk)
    out_packed = pl.pallas_call(
        kernel,
        out_shape=jax.ShapeDtypeStruct((N, Mp // pack, 128), jnp.float32),
        grid=(N, Mp // tile),
        in_specs=[
            pl.BlockSpec((None, P, tr, 128), lambda n, i: (n, 0, i, 0)),
            pl.BlockSpec((128, PH), lambda n, i: (0, 0)),
            pl.BlockSpec((1, PH), lambda n, i: (0, 0)),
            pl.BlockSpec((PH, 128), lambda n, i: (0, 0)),
            pl.BlockSpec((1, 128), lambda n, i: (0, 0)),
        ],
        out_specs=pl.BlockSpec((None, tr, 128), lambda n, i: (n, i, 0)),
        compiler_params=pltpu.CompilerParams(
            dimension_semantics=("parallel", "parallel"),
            vmem_limit_bytes=vmem_limit),
    )(packed, w1e, b1e, w2e, b2e)

    # Unpack: (N, Mp/pack, 128) -> (N, Mp, O_pad) (contiguous) -> slice -> (N*M, O).
    y = out_packed.reshape(N, Mp, o_pad)[:, :M, :O].reshape(N * M, O)
    return {"rgb": y[:, 2:], "sigma": y[:, 0:1], "semantic": y[:, 1:2]}


# --------------------------------------------------------------------------- reference


def _reference_forward(sampled_features, params):
    hp = jax.lax.Precision.HIGHEST
    sf = jnp.mean(sampled_features.astype(jnp.float32), axis=1)       # (N, M, C)
    x = sf.reshape(-1, sf.shape[-1])                                  # (N*M, C)
    h = jnp.dot(x, params["w1"].T, precision=hp) + params["b1"]
    h = jnp.logaddexp(h, 0.0)
    y = jnp.dot(h, params["w2"].T, precision=hp) + params["b2"]
    return {"rgb": y[..., 2:], "sigma": y[..., 0:1], "semantic": y[..., 1:2]}


if __name__ == "__main__":
    key = jax.random.PRNGKey(0)
    k_feat, k_ray, k_param = jax.random.split(key, 3)

    # Small shapes consistent with the module: N=2 ray batches, P=3 triplanes,
    # M=512 samples per batch, C=16 features; decoder_output_dim=4 -> rgb has 3 ch.
    N, P, M, C = 2, 3, 512, 16
    decoder_output_dim = 4

    sampled_features = jax.random.normal(k_feat, (N, P, M, C), jnp.float32)
    ray_directions = jax.random.normal(k_ray, (N, M, 3), jnp.float32)
    params = init_osg_decoder_params(k_param, n_features=C,
                                     decoder_output_dim=decoder_output_dim)

    # float32 path (tile auto-shrinks to 256 samples here to keep >=4 grid steps).
    out = osg_decoder_forward(sampled_features, ray_directions, params)
    jax.block_until_ready(out)

    ref = _reference_forward(sampled_features, params)
    for name in ("rgb", "sigma", "semantic"):
        assert out[name].shape == ref[name].shape, (name, out[name].shape, ref[name].shape)
        assert jnp.allclose(out[name], ref[name], atol=5e-4, rtol=5e-4), name

    # bfloat16 input path (halves the dominant HBM read traffic); compare against a
    # reference evaluated on the same bf16-rounded features (kernel compute stays f32).
    sf_bf16 = sampled_features.astype(jnp.bfloat16)
    out_bf16 = osg_decoder_forward(sf_bf16, ray_directions, params)
    jax.block_until_ready(out_bf16)
    ref_bf16 = _reference_forward(sf_bf16.astype(jnp.float32), params)
    for name in ("rgb", "sigma", "semantic"):
        assert jnp.allclose(out_bf16[name], ref_bf16[name], atol=1e-3, rtol=1e-3), name

    print("KERNEL_OK")
</pallas_src>

<mosaic_0001>
module attributes {stable_mosaic.version = 11 : i64} {
  func.func @_osg_decoder_kernel(%arg0: i32, %arg1: i32, %arg2: memref<1x3x32x128xf32, #tpu.memory_space<vmem>>, %arg3: memref<128x256xf32, #tpu.memory_space<vmem>>, %arg4: memref<1x256xf32, #tpu.memory_space<vmem>>, %arg5: memref<256x128xf32, #tpu.memory_space<vmem>>, %arg6: memref<1x128xf32, #tpu.memory_space<vmem>>, %arg7: memref<1x32x128xf32, #tpu.memory_space<vmem>>) attributes {dimension_semantics = [#tpu.dimension_semantics<parallel>, #tpu.dimension_semantics<parallel>], iteration_bounds = array<i64: 2, 2>, scalar_prefetch = 0 : i64, scratch_operands = 0 : i64, tpu.core_type = #tpu.core_type<tc>, window_params = [{transform_indices = @transform_0, window_bounds = array<i64: 1, 3, 32, 128>}, {pipeline_mode = #tpu.pipeline_mode<synchronous>, transform_indices = @transform_1, window_bounds = array<i64: 128, 256>}, {pipeline_mode = #tpu.pipeline_mode<synchronous>, transform_indices = @transform_2, window_bounds = array<i64: 1, 256>}, {pipeline_mode = #tpu.pipeline_mode<synchronous>, transform_indices = @transform_3, window_bounds = array<i64: 256, 128>}, {pipeline_mode = #tpu.pipeline_mode<synchronous>, transform_indices = @transform_4, window_bounds = array<i64: 1, 128>}, {transform_indices = @transform_5, window_bounds = array<i64: 1, 32, 128>}]} {
    %c0 = arith.constant 0 : index
    %c0_0 = arith.constant 0 : index
    %0 = vector.load %arg4[%c0, %c0_0] : memref<1x256xf32, #tpu.memory_space<vmem>>, vector<1x256xf32>
    %c0_1 = arith.constant 0 : index
    %c0_2 = arith.constant 0 : index
    %1 = vector.load %arg6[%c0_1, %c0_2] : memref<1x128xf32, #tpu.memory_space<vmem>>, vector<1x128xf32>
    %c0_i32 = arith.constant 0 : i32
    %c32_i32 = arith.constant 32 : i32
    %2 = arith.muli %c0_i32, %c32_i32 : i32
    %3 = tpu.assume_multiple %2, 32 : i32
    %c0_3 = arith.constant 0 : index
    %c0_4 = arith.constant 0 : index
    %4 = arith.index_cast %3 : i32 to index
    %c0_5 = arith.constant 0 : index
    %5 = vector.load %arg2[%c0_3, %c0_4, %4, %c0_5] : memref<1x3x32x128xf32, #tpu.memory_space<vmem>>, vector<1x1x32x128xf32>
    %6 = vector.shape_cast %5 : vector<1x1x32x128xf32> to vector<32x128xf32>
    %c0_6 = arith.constant 0 : index
    %c1 = arith.constant 1 : index
    %7 = arith.index_cast %3 : i32 to index
    %c0_7 = arith.constant 0 : index
    %8 = vector.load %arg2[%c0_6, %c1, %7, %c0_7] : memref<1x3x32x128xf32, #tpu.memory_space<vmem>>, vector<1x1x32x128xf32>
    %9 = vector.shape_cast %8 : vector<1x1x32x128xf32> to vector<32x128xf32>
    %10 = arith.addf %6, %9 : vector<32x128xf32>
    %c0_8 = arith.constant 0 : index
    %c2 = arith.constant 2 : index
    %11 = arith.index_cast %3 : i32 to index
    %c0_9 = arith.constant 0 : index
    %12 = vector.load %arg2[%c0_8, %c2, %11, %c0_9] : memref<1x3x32x128xf32, #tpu.memory_space<vmem>>, vector<1x1x32x128xf32>
    %13 = vector.shape_cast %12 : vector<1x1x32x128xf32> to vector<32x128xf32>
    %14 = arith.addf %10, %13 : vector<32x128xf32>
    %c0_10 = arith.constant 0 : index
    %c0_11 = arith.constant 0 : index
    %15 = vector.load %arg3[%c0_10, %c0_11] : memref<128x256xf32, #tpu.memory_space<vmem>>, vector<128x256xf32>
    %cst = arith.constant dense<0.000000e+00> : vector<32x256xf32>
    %16 = tpu.matmul %14, %15, %cst {dimension_numbers = #tpu.dot_dimension_numbers<[1], [0], [0], [1], [0, 0, 1, 1], [], []>, precision = #tpu.contract_precision<fp32>} : vector<32x128xf32>, vector<128x256xf32>, vector<32x256xf32> -> vector<32x256xf32>
    %17 = vector.broadcast %0 : vector<1x256xf32> to vector<32x256xf32>
    %18 = arith.addf %16, %17 : vector<32x256xf32>
    %cst_12 = arith.constant 0.000000e+00 : f32
    %19 = vector.broadcast %cst_12 : f32 to vector<32x256xf32>
    %20 = arith.maximumf %18, %19 : vector<32x256xf32>
    %21 = vector.broadcast %cst_12 : f32 to vector<32x256xf32>
    %22 = arith.subf %18, %21 : vector<32x256xf32>
    %23 = arith.cmpf one, %22, %22 : vector<32x256xf32>
    %24 = vector.broadcast %cst_12 : f32 to vector<32x256xf32>
    %25 = arith.addf %18, %24 : vector<32x256xf32>
    %26 = math.absf %22 : vector<32x256xf32>
    %cst_13 = arith.constant 0.000000e+00 : f32
    %27 = vector.broadcast %cst_13 : f32 to vector<32x256xf32>
    %28 = arith.subf %27, %26 : vector<32x256xf32>
    %29 = math.exp %28 : vector<32x256xf32>
    %30 = math.log1p %29 : vector<32x256xf32>
    %31 = arith.addf %20, %30 : vector<32x256xf32>
    %32 = arith.select %23, %25, %31 : vector<32x256xi1>, vector<32x256xf32>
    %c0_14 = arith.constant 0 : index
    %c0_15 = arith.constant 0 : index
    %33 = vector.load %arg5[%c0_14, %c0_15] : memref<256x128xf32, #tpu.memory_space<vmem>>, vector<256x128xf32>
    %cst_16 = arith.constant dense<0.000000e+00> : vector<32x128xf32>
    %34 = tpu.matmul %32, %33, %cst_16 {dimension_numbers = #tpu.dot_dimension_numbers<[1], [0], [0], [1], [0, 0, 1, 1], [], []>, precision = #tpu.contract_precision<fp32>} : vector<32x256xf32>, vector<256x128xf32>, vector<32x128xf32> -> vector<32x128xf32>
    %35 = vector.broadcast %1 : vector<1x128xf32> to vector<32x128xf32>
    %36 = arith.addf %34, %35 : vector<32x128xf32>
    %c0_17 = arith.constant 0 : index
    %37 = arith.index_cast %3 : i32 to index
    %c0_18 = arith.constant 0 : index
    %38 = vector.load %arg7[%c0_17, %37, %c0_18] : memref<1x32x128xf32, #tpu.memory_space<vmem>>, vector<1x32x128xf32>
    %39 = vector.shape_cast %38 : vector<1x32x128xf32> to vector<32x128xf32>
    %40 = vector.shape_cast %36 : vector<32x128xf32> to vector<1x32x128xf32>
    tpu.vector_store %arg7[%c0_17, %37, %c0_18], %40 {strides = array<i32>} : memref<1x32x128xf32, #tpu.memory_space<vmem>>, vector<1x32x128xf32>,
    %c1_i32 = arith.constant 1 : i32
    return
  }
  func.func @transform_0(%arg0: i32, %arg1: i32) -> (i32, i32, i32, i32) {
    %c0_i32 = arith.constant 0 : i32
    %c0_i32_0 = arith.constant 0 : i32
    %c0_i32_1 = arith.constant 0 : i32
    return %arg0, %c0_i32, %arg1, %c0_i32_0 : i32, i32, i32, i32
  }
  func.func @transform_1(%arg0: i32, %arg1: i32) -> (i32, i32) {
    %c0_i32 = arith.constant 0 : i32
    %c0_i32_0 = arith.constant 0 : i32
    %c0_i32_1 = arith.constant 0 : i32
    return %c0_i32, %c0_i32_0 : i32, i32
  }
  func.func @transform_2(%arg0: i32, %arg1: i32) -> (i32, i32) {
    %c0_i32 = arith.constant 0 : i32
    %c0_i32_0 = arith.constant 0 : i32
    %c0_i32_1 = arith.constant 0 : i32
    return %c0_i32, %c0_i32_0 : i32, i32
  }
  func.func @transform_3(%arg0: i32, %arg1: i32) -> (i32, i32) {
    %c0_i32 = arith.constant 0 : i32
    %c0_i32_0 = arith.constant 0 : i32
    %c0_i32_1 = arith.constant 0 : i32
    return %c0_i32, %c0_i32_0 : i32, i32
  }
  func.func @transform_4(%arg0: i32, %arg1: i32) -> (i32, i32) {
    %c0_i32 = arith.constant 0 : i32
    %c0_i32_0 = arith.constant 0 : i32
    %c0_i32_1 = arith.constant 0 : i32
    return %c0_i32, %c0_i32_0 : i32, i32
  }
  func.func @transform_5(%arg0: i32, %arg1: i32) -> (i32, i32, i32) {
    %c0_i32 = arith.constant 0 : i32
    %c0_i32_0 = arith.constant 0 : i32
    return %arg0, %arg1, %c0_i32 : i32, i32, i32
  }
}

</mosaic_0001>

<bundles_post_ra>
// kernel: tile.13
= control target key start
LH: loop header
LB: loop body
LE: loop exit
PB: predicated region body
PF: predicated region fallthrough
CT: control target
= control target key end

     0   :  { %s22_s0 = inlined_call_operand.vmem [shape: f32[32], index: 0, kind: input, shape index: {}]   ;;  %s23_s1 = inlined_call_operand.vmem [shape: f32[8,32], index: 1, kind: output, shape index: {}]  }
   0x1   :  { %v4_v0 = vld [vmem:[%s22_s0] ss:$0 sm:$0xff] }
   0x2   :  { %5 = vst [vmem:[%s23_s1] sm:$0xff] %v4_v0 }

// kernel: tile.14
= control target key start
LH: loop header
LB: loop body
LE: loop exit
PB: predicated region body
PF: predicated region fallthrough
CT: control target
= control target key end

     0   :  { %s7_s6 = smov 3  ;;  %s14_s9 = smov 3  ;;  %vm4_vm0 = vcmask 261120   ;;  %vm11_vm1 = vcmask 1048320   ;;  %vm18_vm2 = vcmask 785920   ;;  %vm25_vm3 = vcmask 523520   ;;  %s79_s0 = inlined_call_operand.vmem [shape: f32[8,32], index: 0, kind: input, shape index: {}]   ;;  %s80_s1 = inlined_call_operand.vmem [shape: f32[1,256], index: 1, kind: output, shape index: {}]  }
   0x1   :  { %v41_v0 = vld [vmem:[%s79_s0 + $0x3] ss:$4 sm:%s7_s6]   ;;  %s48_s10 = smov 96   ;;  %s21_s11 = smov 3  ;;  %v42_v1 = vld [vmem:[%s79_s0 + $0x2] ss:$4 sm:%s14_s9]  }
   0x2   :  { %9 = vrot.lane.b32.xlu0 %v41_v0, %s48_s10  ;;  %v43_v2 = vld [vmem:[%s79_s0 + $0x1] ss:$4 sm:%s21_s11]   ;;  %s2_s16 = smov 3  ;;  %s49_s17 = smov 32  }
   0x3   :  { %23 = vrot.lane.b32.xlu1 %v43_v2, %s49_s17  ;;  %v3_v3 = vld [vmem:[%s79_s0] ss:$4 sm:%s2_s16]   ;;  %s50_s0 = smov 64  }
   0x4   :  { %5 = vst.msk [vmem:[#allocation0] ss:$8 sm:$0x3] %vm4_vm0, %v3_v3  }
   0x6   :  { %16 = vrot.lane.b32.xlu0 %v42_v1, %s50_s0 }
  0x74   :  { %v10_v4 = vpop.permute.xlu0 %9  }
  0x75   :  { %12 = vst.msk [vmem:[#allocation0] ss:$8 sm:$0x3] %vm11_vm1, %v10_v4   ;;  %v24_v5 = vpop.permute.xlu1 %23  }
  0x78   :  { %v17_v6 = vpop.permute.xlu0 %16  }
  0x79   :  { %19 = vst.msk [vmem:[#allocation0] ss:$8 sm:$0x3] %vm18_vm2, %v17_v6  }
  0x7a   :  { %26 = vst.msk [vmem:[#allocation0] ss:$8 sm:$0x3] %vm25_vm3, %v24_v5  }
  0x81   :  { %v31_v7 = vld [vmem:[#allocation0] sm:$0x1]  ;;  %v36_v8 = vld [vmem:[#allocation0 + $0x8] sm:$0x1] }
  0x82   :  { %34 = vst [vmem:[%s80_s1] sm:$0x1] %v31_v7  ;;  %44 = vst [vmem:[%s80_s1 + $0x1] sm:$0x1] %v36_v8 }

// kernel: tile.18
= control target key start
LH: loop header
LB: loop body
LE: loop exit
PB: predicated region body
PF: predicated region fallthrough
CT: control target
= control target key end

     0   :  { %s22_s0 = inlined_call_operand.vmem [shape: f32[16], index: 0, kind: input, shape index: {}]   ;;  %s23_s1 = inlined_call_operand.vmem [shape: f32[8,16], index: 1, kind: output, shape index: {}]  }
   0x1   :  { %v4_v0 = vld [vmem:[%s22_s0] ss:$0 sm:$0xff] }
   0x2   :  { %5 = vst [vmem:[%s23_s1] sm:$0xff] %v4_v0 }

// kernel: tile.19
= control target key start
LH: loop header
LB: loop body
LE: loop exit
PB: predicated region body
PF: predicated region fallthrough
CT: control target
= control target key end

     0   :  { %s69_s10 = smov 112   ;;  %s70_s11 = smov 80   ;;  %vm3_vm0 = vcmask 130048   ;;  %vm9_vm1 = vcmask 1048448   ;;  %vm15_vm2 = vcmask 917248   ;;  %vm21_vm3 = vcmask 786048   ;;  %s113_s0 = inlined_call_operand.vmem [shape: f32[8,16], index: 0, kind: input, shape index: {}]   ;;  %s114_s1 = inlined_call_operand.vmem [shape: f32[1,128], index: 1, kind: output, shape index: {}]  }
   0x1   :  { %v55_v0 = vld [vmem:[%s113_s0 + $0x7] sm:$0x1]   ;;  %v57_v1 = vld [vmem:[%s113_s0 + $0x5] sm:$0x1]   ;;  %v56_v2 = vld [vmem:[%s113_s0 + $0x6] sm:$0x1]  }
   0x2   :  { %7 = vrot.lane.b32.xlu0 %v55_v0, %s69_s10  ;;  %19 = vrot.lane.b32.xlu1 %v57_v1, %s70_s11  ;;  %v58_v3 = vld [vmem:[%s113_s0 + $0x4] sm:$0x1]   ;;  %v2_v4 = vld [vmem:[%s113_s0] sm:$0x1]   ;;  %s71_s18 = smov 96   ;;  %s72_s19 = smov 64  }
   0x3   :  { %4 = vst.msk [vmem:[#allocation0] sm:$0x1] %vm3_vm0, %v2_v4   ;;  %v59_v5 = vld [vmem:[%s113_s0 + $0x3] sm:$0x1]   ;;  %v60_v6 = vld [vmem:[%s113_s0 + $0x2] sm:$0x1]  }
   0x4   :  { %s73_s24 = smov 48   ;;  %s74_s25 = smov 32   ;;  %v61_v7 = vld [vmem:[%s113_s0 + $0x1] sm:$0x1]   ;;  %vm27_vm4 = vcmask 654848   ;;  %vm33_vm5 = vcmask 523648  }
   0x5   :  { %s75_s0 = smov 16   ;;  %vm39_vm6 = vcmask 392448   ;;  %vm45_vm7 = vcmask 261248  }
   0x6   :  { %13 = vrot.lane.b32.xlu0 %v56_v2, %s71_s18  ;;  %25 = vrot.lane.b32.xlu1 %v58_v3, %s72_s19 }
   0xa   :  { %31 = vrot.lane.b32.xlu0 %v59_v5, %s73_s24  ;;  %37 = vrot.lane.b32.xlu1 %v60_v6, %s74_s25 }
   0xe   :  { %43 = vrot.lane.b32.xlu0 %v61_v7, %s75_s0 }
  0x74   :  { %v8_v8 = vpop.permute.xlu0 %7   ;;  %v20_v9 = vpop.permute.xlu1 %19  }
  0x75   :  { %10 = vst.msk [vmem:[#allocation0] sm:$0x1] %vm9_vm1, %v8_v8  }
  0x78   :  { %v14_v10 = vpop.permute.xlu0 %13   ;;  %v26_v11 = vpop.permute.xlu1 %25  }
  0x79   :  { %16 = vst.msk [vmem:[#allocation0] sm:$0x1] %vm15_vm2, %v14_v10  }
  0x7a   :  { %22 = vst.msk [vmem:[#allocation0] sm:$0x1] %vm21_vm3, %v20_v9  }
  0x7b   :  { %28 = vst.msk [vmem:[#allocation0] sm:$0x1] %vm27_vm4, %v26_v11  }
  0x7c   :  { %v32_v12 = vpop.permute.xlu0 %31   ;;  %v38_v13 = vpop.permute.xlu1 %37  }
  0x7d   :  { %34 = vst.msk [vmem:[#allocation0] sm:$0x1] %vm33_vm5, %v32_v12  }
  0x7e   :  { %40 = vst.msk [vmem:[#allocation0] sm:$0x1] %vm39_vm6, %v38_v13  }
  0x80   :  { %v44_v14 = vpop.permute.xlu0 %43  }
  0x81   :  { %46 = vst.msk [vmem:[#allocation0] sm:$0x1] %vm45_vm7, %v44_v14  }
  0x88   :  { %v51_v15 = vld [vmem:[#allocation0] sm:$0x1] }
  0x89   :  { %54 = vst [vmem:[%s114_s1] sm:$0x1] %v51_v15 }

// kernel: osg_decoder_forward.1
= control target key start
LH: loop header
LB: loop body
LE: loop exit
PB: predicated region body
PF: predicated region fallthrough
CT: control target
= control target key end

     0   :  { %s3179_s18 = smov 0   ;;  %s3181_s19 = smov 0   ;;  %s4916_s0 = inlined_call_operand.vmem [shape: f32[2,3,64,128], index: 0, kind: input, shape index: {}]   ;;  %s4917_s1 = inlined_call_operand.vmem [shape: f32[128,256], index: 1, kind: input, shape index: {}]   ;;  %s4918_s2 = inlined_call_operand.vmem [shape: f32[1,256], index: 2, kind: input, shape index: {}]   ;;  %s4919_s3 = inlined_call_operand.vmem [shape: f32[256,128], index: 3, kind: input, shape index: {}]   ;;  %s4920_s4 = inlined_call_operand.vmem [shape: f32[1,128], index: 4, kind: input, shape index: {}]   ;;  %s4921_s5 = inlined_call_operand.vmem [shape: f32[2,64,128], index: 5, kind: output, shape index: {}]  }
   0x1   :  { %s3183_s20 = smov 0   ;;  %s3185_s21 = smov 0  }
   0x2   :  { %s3187_s22 = smov 0   ;;  %s3189_s23 = smov 0  }
   0x3   :  { %s3191_s24 = smov 0  }
   0x4 LB: > { %s24_s25 = sadd.s32 1, %s3138_s22  ;;  %s27_s26 = sadd.s32 1, %s3142_s23  ;;  %s3146_s24 = sphi %s3191_s24, %s15_s24   ;;  %s3142_s23 = sphi %s3189_s23, %s5456_s23   ;;  %s3138_s22 = sphi %s3187_s22, %s5455_s22   ;;  %s3134_s21 = sphi %s3185_s21, %s5454_s21   ;;  %s3130_s20 = sphi %s3183_s20, %s5453_s20   ;;  %s3126_s19 = sphi %s3181_s19, %s5452_s19   ;;  %s3122_s18 = sphi %s3179_s18, %s5451_s18  }
   0x5   : > { %p25_p0 = scmp.ge.s32.totalorder %s24_s25, 2  ;;  %p43_p1 = scmp.ne.s32.totalorder %s3126_s19, %s3122_s18 }
   0x6   : > { %p44_p2 = scmp.eq.s32.totalorder %s3146_s24, 0  ;;  %s36_s30 = sadd.s32 1, %s3126_s19 }
   0x7   : > { %s5458_s25 = smov (%p25_p0, %s24_s25), 0  ;;  %s5460_s26 = smov (!%p25_p0, %s27_s26), %s3142_s23 }
   0x8   : > { %p45_p3 = por %p44_p2, %p43_p1  ;;  %p29_p4 = scmp.ge.s32.totalorder %s5460_s26, 2 }
   0x9   : > { %s32_s27 = ssub.s32 %s3138_s22, %s5458_s25  ;;  %p2718_p6 = scmp.ge.s32.totalorder %s3146_s24, 4 }
   0xa   : > { %s5462_s26 = smov (%p29_p4, %s5460_s26), 0 }
   0xb   : > { %s31_s28 = ssub.s32 %s3142_s23, %s5462_s26  ;;  %193 = sbr.rel (%p2718_p6) target bundleno = 30 (0x1e), region = 32 }
   0xc   : > { %s33_s29 = sor.u32 %s32_s27, %s31_s28 }
   0xd   : > { %p34_p5 = scmp.eq.s32.totalorder %s33_s29, 0 }
   0xf   : > { %s3230_s6 = scalar_select %p34_p5, %s3126_s19, %s36_s30  }
  0x10   : > { %196 = sbr.rel (!%p45_p3) target bundleno = 30 (0x1e), region = 36  ;;  %s198_s7 = sand.u32 (%p45_p3), 1, %s3126_s19  }
  0x11   : > { %s3000_s8 = smul.u32 (%p45_p3), 96, %s198_s7  ;;  %s2719_s9 = sshll.u32 (%p45_p3), %s3138_s22, 2 }
  0x12   : > { %s3001_s10 = smul.u32 (%p45_p3), 24, %s3142_s23 }
  0x13   : > { %s200_s16 = scalar_lea.vmem (%p45_p3), [#allocation2], %s3000_s8 }
  0x14   : > { %s203_s11 = sadd.s32 (%p45_p3), %s3001_s10, %s2719_s9 }
  0x15   : > { %s2720_s12 = sshll.u32 %s203_s11, 3 }
  0x16   : > { %s205_s15 = scalar_lea.vmem %s4916_s0, %s2720_s12 }
  0x17   : > { %v256_v0 = vld [vmem:[%s205_s15] sm:$0xff]  ;;  %v258_v1 = vld [vmem:[%s205_s15 + $0x8] sm:$0xff]  ;;  %v260_v2 = vld [vmem:[%s205_s15 + $0x10] sm:$0xff] }
  0x18   : > { %257 = vst [vmem:[%s200_s16] sm:$0xff] %v256_v0  ;;  %259 = vst [vmem:[%s200_s16 + $0x8] sm:$0xff] %v258_v1  ;;  %v262_v3 = vld [vmem:[%s205_s15 + $0x18] sm:$0xff]  ;;  %v264_v4 = vld [vmem:[%s205_s15 + $0x40] sm:$0xff] }
  0x19   : > { %261 = vst [vmem:[%s200_s16 + $0x10] sm:$0xff] %v260_v2  ;;  %v266_v5 = vld [vmem:[%s205_s15 + $0x48] sm:$0xff]  ;;  %263 = vst [vmem:[%s200_s16 + $0x18] sm:$0xff] %v262_v3  ;;  %v268_v6 = vld [vmem:[%s205_s15 + $0x50] sm:$0xff] }
  0x1a   : > { %265 = vst [vmem:[%s200_s16 + $0x20] sm:$0xff] %v264_v4  ;;  %267 = vst [vmem:[%s200_s16 + $0x28] sm:$0xff] %v266_v5  ;;  %v270_v7 = vld [vmem:[%s205_s15 + $0x58] sm:$0xff]  ;;  %v272_v8 = vld [vmem:[%s205_s15 + $0x80] sm:$0xff] }
  0x1b   : > { %269 = vst [vmem:[%s200_s16 + $0x30] sm:$0xff] %v268_v6  ;;  %271 = vst [vmem:[%s200_s16 + $0x38] sm:$0xff] %v270_v7  ;;  %v274_v9 = vld [vmem:[%s205_s15 + $0x88] sm:$0xff]  ;;  %v276_v10 = vld [vmem:[%s205_s15 + $0x90] sm:$0xff] }
  0x1c   : > { %273 = vst [vmem:[%s200_s16 + $0x40] sm:$0xff] %v272_v8  ;;  %v278_v11 = vld [vmem:[%s205_s15 + $0x98] sm:$0xff]  ;;  %275 = vst [vmem:[%s200_s16 + $0x48] sm:$0xff] %v274_v9 }
  0x1d   : > { %277 = vst [vmem:[%s200_s16 + $0x50] sm:$0xff] %v276_v10  ;;  %279 = vst [vmem:[%s200_s16 + $0x58] sm:$0xff] %v278_v11 }
  0x1e PF: > { %p2721_p7 = scmp.ge.s32.totalorder %s3146_s24, 1  ;;  %p284_p8 = scmp.lt.s32.totalorder %s3146_s24, 5 }
  0x20   : > { %p285_p9 = pnand %p2721_p7, %p284_p8 }
  0x22   : > { %288 = sbr.rel (%p285_p9) target bundleno = 713 (0x2c9), region = 74 }
  0x27   : > { %v390_v12 = vld [vmem:[%s4917_s1 + $0xf8] sm:$0xff]  ;;  %v389_v13 = vld [vmem:[%s4917_s1 + $0xf0] sm:$0xff]  ;;  %v388_v14 = vld [vmem:[%s4917_s1 + $0xe8] sm:$0xff]  ;;  %v4936_v21 = vmov 0.0   ;;  %s291_s9 = sand.u32 1, %s3122_s18   ;;  %s2722_s10 = sshll.u32 %s3130_s20, 2 }
  0x28   : > { %v3250_v15 = vand.u32 4294901760, %v390_v12  ;;  %v3252_v16 = vand.u32 4294901760, %v389_v13  ;;  %v3254_v17 = vand.u32 4294901760, %v388_v14  ;;  %v387_v18 = vld [vmem:[%s4917_s1 + $0xe0] sm:$0xff]  ;;  %v386_v19 = vld [vmem:[%s4917_s1 + $0xd8] sm:$0xff]  ;;  %v385_v20 = vld [vmem:[%s4917_s1 + $0xd0] sm:$0xff]  ;;  %498 = vmatprep.mubr.f32.mxu0 %v4936_v21  ;;  %767 = vmatprep.mubr.f32.mxu1 %v4936_v21 }
  0x29   : > { %v3267_v22 = vand.u32 4294901760, %v387_v18  ;;  %v3269_v23 = vand.u32 4294901760, %v386_v19  ;;  %v3271_v24 = vand.u32 4294901760, %v385_v20  ;;  %v384_v25 = vld [vmem:[%s4917_s1 + $0xc8] sm:$0xff]  ;;  %v383_v26 = vld [vmem:[%s4917_s1 + $0xc0] sm:$0xff]  ;;  %v382_v27 = vld [vmem:[%s4917_s1 + $0xb8] sm:$0xff] }
  0x2a   : > { %403 = vmatprep.subr.mxu0 %v3250_v15  ;;  %v3283_v28 = vand.u32 4294901760, %v384_v25  ;;  %v3285_v29 = vand.u32 4294901760, %v383_v26  ;;  %v3287_v30 = vand.u32 4294901760, %v382_v27  ;;  %v3290_v31 = vsub.f32 %v390_v12, %v3250_v15  ;;  %v3295_v32 = vld [vmem:[%s4917_s1 + $0xb0] sm:$0xff]  ;;  %v3300_v33 = vld [vmem:[%s4917_s1 + $0xa8] sm:$0xff]  ;;  %v3305_v34 = vld [vmem:[%s4917_s1 + $0xa0] sm:$0xff] }
  0x2b   : > { %405 = vmatpush1.msra.mxu0 %v3252_v16  ;;  %v3309_v35 = vand.u32 4294901760, %v3295_v32  ;;  %v3312_v36 = vsub.f32 %v389_v13, %v3252_v16  ;;  %v3315_v37 = vand.u32 4294901760, %v3300_v33  ;;  %v3318_v38 = vsub.f32 %v388_v14, %v3254_v17  ;;  %v3323_v39 = vld [vmem:[%s4917_s1 + $0x98] sm:$0xff]  ;;  %v3328_v40 = vld [vmem:[%s4917_s1 + $0x90] sm:$0xff]  ;;  %v3333_v41 = vld [vmem:[%s4917_s1 + $0x88] sm:$0xff]  ;;  %s3577_s15 = smul.u32 96, %s291_s9 }
  0x2c   : > { %5164 = vst [vmem:[#allocation3_spill] sm:$0xff] %v3290_v31  ;;  %407 = vmatprep.subr.mxu0 %v3254_v17  ;;  %v4935_v42 = vand.u32 4294901760, %v3290_v31  ;;  %v3338_v43 = vand.u32 4294901760, %v3305_v34  ;;  %v3341_v44 = vsub.f32 %v387_v18, %v3267_v22  ;;  %v3344_v45 = vand.u32 4294901760, %v3323_v39  ;;  %v3358_v50 = vld [vmem:[%s4917_s1 + $0x80] sm:$0xff]  ;;  %v3385_v59 = vld [vmem:[%s4917_s1 + $0x78] sm:$0xff] }
  0x2d   : > { %409 = vmatpush1.msra.mxu0 %v3267_v22  ;;  %v4933_v46 = vand.u32 4294901760, %v3312_v36  ;;  %v4932_v47 = vand.u32 4294901760, %v3318_v38  ;;  %v3350_v48 = vsub.f32 %v386_v19, %v3269_v23  ;;  %v3353_v49 = vand.u32 4294901760, %v3328_v40  ;;  %v3398_v0 = vld [vmem:[%s4917_s1 + $0x70] sm:$0xff]  ;;  %v3408_v5 = vld [vmem:[%s4917_s1 + $0x68] sm:$0xff]  ;;  %v3423_v10 = vld [vmem:[%s4917_s1 + $0x60] sm:$0xff] }
  0x2e   : > { %5165 = vst [vmem:[#allocation4_spill] sm:$0xff] %v3344_v45  ;;  %411 = vmatprep.subr.mxu0 %v3269_v23  ;;  %v546_v51 = vsub.f32 %v3290_v31, %v4935_v42  ;;  %v4930_v52 = vand.u32 4294901760, %v3341_v44  ;;  %v3366_v53 = vsub.f32 %v385_v20, %v3271_v24  ;;  %v3369_v54 = vand.u32 4294901760, %v3333_v41  ;;  %v3438_v18 = vld [vmem:[%s4917_s1 + $0x58] sm:$0xff]  ;;  %s3665_s7 = scalar_lea.vmem [#allocation2], %s3577_s15  ;;  %p324_p10 = scmp.lt.s32.totalorder %s3134_s21, 1 }
  0x2f   : > { %5166 = vst [vmem:[#allocation5_spill] sm:$0xff] %v3353_v49  ;;  %413 = vmatpush1.msra.mxu0 %v3271_v24  ;;  %v552_v55 = vsub.f32 %v3312_v36, %v4933_v46  ;;  %v558_v56 = vsub.f32 %v3318_v38, %v4932_v47  ;;  %v4928_v57 = vand.u32 4294901760, %v3350_v48  ;;  %v3380_v58 = vsub.f32 %v384_v25, %v3283_v28  ;;  %v3575_v42 = vld [vmem:[%s4917_s1 + $0x18] sm:$0xff]  ;;  %p326_p11 = scmp.lt.s32.totalorder %s2722_s10, 7 }
  0x30   : > { %5167 = vst [vmem:[#allocation6_spill] sm:$0xff] %v3369_v54  ;;  %415 = vmatprep.subr.mxu0 %v3283_v28  ;;  %v547_v60 = vand.u32 4294901760, %v546_v51  ;;  %v564_v61 = vsub.f32 %v3341_v44, %v4930_v52  ;;  %v4927_v62 = vand.u32 4294901760, %v3366_v53  ;;  %v3393_v63 = vand.u32 4294901760, %v3358_v50  ;;  %v3548_v52 = vld [vmem:[%s4917_s1 + $0x28] sm:$0xff]  ;;  %s5464_s21 = smov (!%p324_p10, %s3134_s21), 1 }
  0x31   : > { %417 = vmatpush1.msra.mxu0 %v3285_v29  ;;  %v553_v1 = vand.u32 4294901760, %v552_v55  ;;  %v559_v2 = vand.u32 4294901760, %v558_v56  ;;  %v570_v3 = vsub.f32 %v3350_v48, %v4928_v57  ;;  %v4925_v4 = vand.u32 4294901760, %v3380_v58  ;;  %v3531_v57 = vld [vmem:[%s4917_s1 + $0x30] sm:$0xff]  ;;  %s5466_s10 = smov (!%p326_p11, %s2722_s10), 7  ;;  %s2723_s20 = sshll.u32 %s5464_s21, 3 }
  0x32   : > { %5168 = vst [vmem:[#allocation7_spill] sm:$0xff] %v3393_v63  ;;  %419 = vmatprep.subr.mxu0 %v3287_v30  ;;  %548 = vmatprep.subr.mxu1 %v547_v60  ;;  %v565_v6 = vand.u32 4294901760, %v564_v61  ;;  %v576_v7 = vsub.f32 %v3366_v53, %v4927_v62  ;;  %v3415_v8 = vsub.f32 %v383_v26, %v3285_v29  ;;  %v3418_v9 = vand.u32 4294901760, %v3385_v59  ;;  %s329_s12 = sadd.s32 %s2723_s20, %s5466_s10 }
  0x33   : > { %421 = vmatpush1.msra.mxu0 %v3309_v35  ;;  %554 = vmatpush1.msra.mxu1 %v553_v1  ;;  %v571_v11 = vand.u32 4294901760, %v570_v3  ;;  %v582_v12 = vsub.f32 %v3380_v58, %v4925_v4  ;;  %v3430_v13 = vsub.f32 %v382_v27, %v3287_v30  ;;  %v3433_v14 = vand.u32 4294901760, %v3398_v0  ;;  %v3452_v27 = vld [vmem:[%s4917_s1 + $0x50] sm:$0xff]  ;;  %s2724_s13 = sshll.u32 %s329_s12, 3 }
  0x34   : > { %5169 = vst [vmem:[#allocation8_spill] sm:$0xff] %v3418_v9  ;;  %423 = vmatprep.subr.mxu0 %v3315_v37  ;;  %560 = vmatprep.subr.mxu1 %v559_v2  ;;  %v577_v19 = vand.u32 4294901760, %v576_v7  ;;  %v4924_v20 = vand.u32 4294901760, %v3415_v8  ;;  %v3444_v25 = vsub.f32 %v3295_v32, %v3309_v35  ;;  %v3447_v26 = vand.u32 4294901760, %v3408_v5  ;;  %s4887_s15 = scalar_lea.vmem %s4921_s5, %s2724_s13 }
  0x35   : > { %5170 = vst [vmem:[#allocation9_spill] sm:$0xff] %v3433_v14  ;;  %425 = vmatpush1.msra.mxu0 %v3338_v43  ;;  %566 = vmatpush1.msra.mxu1 %v565_v6  ;;  %v583_v51 = vand.u32 4294901760, %v582_v12  ;;  %v4922_v55 = vand.u32 4294901760, %v3430_v13  ;;  %v3458_v56 = vsub.f32 %v3300_v33, %v3315_v37  ;;  %v3461_v32 = vand.u32 4294901760, %v3423_v10  ;;  %v3478_v33 = vld [vmem:[%s4917_s1 + $0x48] sm:$0xff] }
  0x36   : > { %5171 = vst [vmem:[#allocation10_spill] sm:$0xff] %v3447_v26  ;;  %427 = vmatprep.subr.mxu0 %v3344_v45  ;;  %572 = vmatprep.subr.mxu1 %v571_v11  ;;  %v588_v60 = vsub.f32 %v3415_v8, %v4924_v20  ;;  %v4923_v61 = vand.u32 4294901760, %v3444_v25  ;;  %v3470_v1 = vsub.f32 %v3305_v34, %v3338_v43  ;;  %v3473_v2 = vand.u32 4294901760, %v3438_v18 }
  0x37   : > { %5172 = vst [vmem:[#allocation11_spill] sm:$0xff] %v3461_v32  ;;  %429 = vmatpush1.msra.mxu0 %v3353_v49  ;;  %578 = vmatpush1.msra.mxu1 %v577_v19  ;;  %v594_v3 = vsub.f32 %v3430_v13, %v4922_v55  ;;  %v4926_v6 = vand.u32 4294901760, %v3458_v56  ;;  %v3487_v34 = vsub.f32 %v3323_v39, %v3344_v45  ;;  %v3490_v7 = vand.u32 4294901760, %v3452_v27  ;;  %v3504_v39 = vld [vmem:[%s4917_s1 + $0x40] sm:$0xff] }
  0x38   : > { %5173 = vst [vmem:[#allocation12_spill] sm:$0xff] %v3473_v2  ;;  %431 = vmatprep.subr.mxu0 %v3369_v54  ;;  %584 = vmatprep.subr.mxu1 %v583_v51  ;;  %v589_v11 = vand.u32 4294901760, %v588_v60  ;;  %v600_v12 = vsub.f32 %v3444_v25, %v4923_v61  ;;  %v4929_v19 = vand.u32 4294901760, %v3470_v1  ;;  %v3499_v55 = vsub.f32 %v3328_v40, %v3353_v49  ;;  %v3517_v40 = vld [vmem:[%s4917_s1 + $0x38] sm:$0xff] }
  0x39   : > { %5174 = vst [vmem:[#allocation13_spill] sm:$0xff] %v3490_v7  ;;  %433 = vmatpush1.msra.mxu0 %v3393_v63  ;;  %v595_v51 = vand.u32 4294901760, %v594_v3  ;;  %v606_v60 = vsub.f32 %v3458_v56, %v4926_v6  ;;  %v4931_v61 = vand.u32 4294901760, %v3487_v34  ;;  %v3512_v20 = vand.u32 4294901760, %v3478_v33 }
  0x3a   : > { %590 = vmatpush1.msra.mxu1 %v589_v11  ;;  %435 = vmatprep.subr.mxu0 %v3418_v9  ;;  %v601_v4 = vand.u32 4294901760, %v600_v12  ;;  %v612_v3 = vsub.f32 %v3470_v1, %v4929_v19  ;;  %v4934_v6 = vand.u32 4294901760, %v3499_v55  ;;  %v3526_v62 = vsub.f32 %v3333_v41, %v3369_v54 }
  0x3b   : > { %5175 = vst [vmem:[#allocation14_spill] sm:$0xff] %v3512_v20  ;;  %596 = vmatprep.subr.mxu1 %v595_v51  ;;  %437 = vmatpush1.msra.mxu0 %v3433_v14  ;;  %v607_v11 = vand.u32 4294901760, %v606_v60  ;;  %v618_v12 = vsub.f32 %v3487_v34, %v4931_v61  ;;  %v3539_v19 = vand.u32 4294901760, %v3504_v39  ;;  %v3543_v41 = vsub.f32 %v3358_v50, %v3393_v63  ;;  %v3561_v50 = vld [vmem:[%s4917_s1 + $0x20] sm:$0xff] }
  0x3c   : > { %602 = vmatpush1.msra.mxu1 %v601_v4  ;;  %439 = vmatprep.subr.mxu0 %v3447_v26  ;;  %v613_v51 = vand.u32 4294901760, %v612_v3  ;;  %v624_v60 = vsub.f32 %v3499_v55, %v4934_v6  ;;  %v4940_v61 = vand.u32 4294901760, %v3526_v62  ;;  %v3556_v47 = vand.u32 4294901760, %v3517_v40 }
  0x3d   : > { %608 = vmatprep.subr.mxu1 %v607_v11  ;;  %441 = vmatpush1.msra.mxu0 %v3461_v32  ;;  %v619_v4 = vand.u32 4294901760, %v618_v12  ;;  %v4941_v3 = vand.u32 4294901760, %v3543_v41  ;;  %v3567_v46 = vsub.f32 %v3385_v59, %v3418_v9  ;;  %v3570_v6 = vand.u32 4294901760, %v3531_v57 }
  0x3e   : > { %5176 = vst [vmem:[#allocation15_spill] sm:$0xff] %v3556_v47  ;;  %614 = vmatpush1.msra.mxu1 %v613_v51  ;;  %443 = vmatprep.subr.mxu0 %v3473_v2  ;;  %v625_v11 = vand.u32 4294901760, %v624_v60  ;;  %v630_v12 = vsub.f32 %v3526_v62, %v4940_v61  ;;  %v3585_v59 = vsub.f32 %v3398_v0, %v3433_v14  ;;  %v3588_v21 = vand.u32 4294901760, %v3548_v52  ;;  %v3605_v0 = vld [vmem:[%s4917_s1 + $0x10] sm:$0xff] }
  0x3f   : > { %5177 = vst [vmem:[#allocation16_spill] sm:$0xff] %v3570_v6  ;;  %620 = vmatprep.subr.mxu1 %v619_v4  ;;  %445 = vmatpush1.msra.mxu0 %v3490_v7  ;;  %v636_v51 = vsub.f32 %v3543_v41, %v4941_v3  ;;  %v3597_v9 = vsub.f32 %v3408_v5, %v3447_v26  ;;  %v3600_v61 = vand.u32 4294901760, %v3561_v50  ;;  %v3614_v5 = vand.u32 4294901760, %v3575_v42  ;;  %v3619_v26 = vld [vmem:[%s4917_s1 + $0x8] sm:$0xff] }
  0x40   : > { %5178 = vst [vmem:[#allocation17_spill] sm:$0xff] %v3588_v21  ;;  %626 = vmatpush1.msra.mxu1 %v625_v11  ;;  %447 = vmatprep.subr.mxu0 %v3512_v20  ;;  %v631_v4 = vand.u32 4294901760, %v630_v12  ;;  %v3611_v60 = vsub.f32 %v3423_v10, %v3461_v32  ;;  %v5183_v14 = vand.u32 4294901760, %v3567_v46  ;;  %v3628_v10 = vsub.f32 %v3438_v18, %v3473_v2  ;;  %v3645_v18 = vld [vmem:[%s4917_s1] sm:$0xff] }
  0x41   : > { %5179 = vst [vmem:[#allocation18_spill] sm:$0xff] %v3597_v9  ;;  %5180 = vst [vmem:[#allocation19_spill] sm:$0xff] %v3600_v61  ;;  %449 = vmatpush1.msra.mxu0 %v3539_v19  ;;  %v637_v11 = vand.u32 4294901760, %v636_v51  ;;  %v4958_v3 = vand.u32 4294901760, %v3597_v9  ;;  %v5185_v32 = vand.u32 4294901760, %v3585_v59  ;;  %v3636_v54 = vand.u32 4294901760, %v3605_v0 }
  0x42   : > { %5181 = vst [vmem:[#allocation20_spill] sm:$0xff] %v3611_v60  ;;  %5182 = vst [vmem:[#allocation21_spill] sm:$0xff] %v3614_v5  ;;  %v642_v12 = vsub.f32 %v3567_v46, %v5183_v14  ;;  %632 = vmatprep.subr.mxu1 %v631_v4  ;;  %451 = vmatprep.subr.mxu0 %v3556_v47  ;;  %v3640_v14 = vsub.f32 %v3452_v27, %v3490_v7  ;;  %v3653_v2 = vand.u32 4294901760, %v3619_v26  ;;  %v2725_v51 = vld [vmem:[%s3665_s7 + $0x20] sm:$0xff] }
  0x43   : > { %5184 = vst [vmem:[#allocation22_spill] sm:$0xff] %v3628_v10  ;;  %v648_v63 = vsub.f32 %v3585_v59, %v5185_v32  ;;  %5186 = vst [vmem:[#allocation23_spill] sm:$0xff] %v3636_v54  ;;  %638 = vmatpush1.msra.mxu1 %v637_v11  ;;  %453 = vmatpush1.msra.mxu0 %v3570_v6  ;;  %v654_v32 = vsub.f32 %v3597_v9, %v4958_v3  ;;  %v5188_v7 = vand.u32 4294901760, %v3611_v60  ;;  %v335_v3 = vld [vmem:[%s3665_s7] sm:$0xff] }
  0x44   : > { %v643_v4 = vand.u32 4294901760, %v642_v12  ;;  %5187 = vst [vmem:[#allocation24_spill] sm:$0xff] %v3653_v2  ;;  %455 = vmatprep.subr.mxu0 %v3588_v21  ;;  %v3662_v12 = vsub.f32 %v3478_v33, %v3512_v20  ;;  %v5189_v9 = vand.u32 4294901760, %v3628_v10  ;;  %v3674_v11 = vand.u32 4294901760, %v3645_v18 }
  0x45   : > { %v649_v27 = vand.u32 4294901760, %v648_v63  ;;  %v660_v49 = vsub.f32 %v3611_v60, %v5188_v7  ;;  %v655_v63 = vand.u32 4294901760, %v654_v32  ;;  %457 = vmatpush1.msra.mxu0 %v3600_v61  ;;  %v3678_v33 = vsub.f32 %v3504_v39, %v3539_v19 }
  0x46   : > { %644 = vmatprep.subr.mxu1 %v643_v4  ;;  %v666_v7 = vsub.f32 %v3628_v10, %v5189_v9  ;;  %5190 = vst [vmem:[#allocation25_spill] sm:$0xff] %v3674_v11  ;;  %459 = vmatprep.subr.mxu0 %v3614_v5  ;;  %v5191_v4 = vand.u32 4294901760, %v3640_v14  ;;  %v4971_v60 = vand.u32 4294901760, %v3662_v12  ;;  %v3687_v9 = vsub.f32 %v3517_v40, %v3556_v47  ;;  %v2729_v10 = vld [vmem:[%s3665_s7 + $0x40] sm:$0xff] }
  0x47   : > { %650 = vmatpush1.msra.mxu1 %v649_v27  ;;  %v661_v20 = vand.u32 4294901760, %v660_v49  ;;  %461 = vmatpush1.msra.mxu0 %v3636_v54  ;;  %v4970_v39 = vand.u32 4294901760, %v3678_v33  ;;  %v345_v49 = vadd.f32 %v2725_v51, %v335_v3  ;;  %v3694_v27 = vsub.f32 %v3531_v57, %v3570_v6 }
  0x48   : > { %v672_v32 = vsub.f32 %v3640_v14, %v5191_v4  ;;  %656 = vmatprep.subr.mxu1 %v655_v63  ;;  %v667_v45 = vand.u32 4294901760, %v666_v7  ;;  %463 = vmatprep.subr.mxu0 %v3653_v2  ;;  %v678_v40 = vsub.f32 %v3662_v12, %v4971_v60  ;;  %v4969_v63 = vand.u32 4294901760, %v3687_v9  ;;  %v336_v60 = vld [vmem:[%s3665_s7 + $0x8] sm:$0xff] }
  0x49   : > { %662 = vmatpush1.msra.mxu1 %v661_v20  ;;  %v3703_v7 = vsub.f32 %v3548_v52, %v3588_v21  ;;  %465 = vmatpush1.msra.mxu0 %v3674_v11  ;;  %v684_v57 = vsub.f32 %v3678_v33, %v4970_v39  ;;  %v355_v20 = vadd.f32 %v2729_v10, %v345_v49  ;;  %v4974_v3 = vand.u32 4294901760, %v3694_v27 }
  0x4a   : > { %v673_v4 = vand.u32 4294901760, %v672_v32  ;;  %668 = vmatprep.subr.mxu1 %v667_v45  ;;  %v3712_v51 = vsub.f32 %v3561_v50, %v3600_v61  ;;  %v679_v32 = vand.u32 4294901760, %v678_v40  ;;  %v690_v45 = vsub.f32 %v3687_v9, %v4969_v63  ;;  %798 = vmatprep.subr.mxu0 %v3290_v31  ;;  %v2727_v61 = vld [vmem:[%s3665_s7 + $0x30] sm:$0xff]  ;;  %v338_v31 = vld [vmem:[%s3665_s7 + $0x18] sm:$0xff] }
  0x4b   : > { %v4975_v52 = vand.u32 4294901760, %v3703_v7  ;;  %v3721_v10 = vsub.f32 %v3575_v42, %v3614_v5  ;;  %v685_v49 = vand.u32 4294901760, %v684_v57  ;;  %v3723_v50 = vand.u32 4294901760, %v355_v20  ;;  %v2726_v5 = vld [vmem:[%s3665_s7 + $0x28] sm:$0xff]  ;;  %v337_v42 = vld [vmem:[%s3665_s7 + $0x10] sm:$0xff] }
  0x4c   : > { %674 = vmatpush1.msra.mxu1 %v673_v4  ;;  %v696_v4 = vsub.f32 %v3694_v27, %v4974_v3  ;;  %v691_v63 = vand.u32 4294901760, %v690_v45  ;;  %v3735_v57 = vsub.f32 %v3605_v0, %v3636_v54 }
  0x4d   : > { %5192 = vst [vmem:[#allocation26_spill] sm:$0xff] %v3723_v50  ;;  %680 = vmatprep.subr.mxu1 %v679_v32  ;;  %v702_v39 = vsub.f32 %v3703_v7, %v4975_v52  ;;  %v3740_v3 = vsub.f32 %v355_v20, %v3723_v50  ;;  %v5193_v32 = vand.u32 4294901760, %v3712_v51  ;;  %v3747_v52 = vsub.f32 %v3619_v26, %v3653_v2 }
  0x4e   : > { %686 = vmatpush1.msra.mxu1 %v685_v49  ;;  %v697_v40 = vand.u32 4294901760, %v696_v4  ;;  %v5195_v54 = vand.u32 4294901760, %v3721_v10  ;;  %v4988_v20 = vand.u32 4294901760, %v3735_v57  ;;  %v3757_v4 = vsub.f32 %v3645_v18, %v3674_v11  ;;  %v2731_v11 = vld [vmem:[%s3665_s7 + $0x50] sm:$0xff] }
  0x4f   : > { %v708_v45 = vsub.f32 %v3712_v51, %v5193_v32  ;;  %5194 = vst [vmem:[#allocation27_spill] sm:$0xff] %v3747_v52  ;;  %692 = vmatprep.subr.mxu1 %v691_v63  ;;  %v703_v0 = vand.u32 4294901760, %v702_v39  ;;  %v2730_v32 = vld [vmem:[%s3665_s7 + $0x48] sm:$0xff]  ;;  %v4990_v21 = vand.u32 4294901760, %v3740_v3  ;;  %v4992_v2 = vand.u32 4294901760, %v3747_v52 }
  0x50   : > { %v714_v49 = vsub.f32 %v3721_v10, %v5195_v54  ;;  %5196 = vst [vmem:[#allocation28_spill] sm:$0xff] %v3757_v4  ;;  %698 = vmatpush1.msra.mxu1 %v697_v40  ;;  %v346_v63 = vadd.f32 %v2726_v5, %v336_v60  ;;  %v720_v54 = vsub.f32 %v3735_v57, %v4988_v20  ;;  %v4991_v6 = vand.u32 4294901760, %v3757_v4 }
  0x51   : > { %v709_v26 = vand.u32 4294901760, %v708_v45  ;;  %704 = vmatprep.subr.mxu1 %v703_v0  ;;  %v347_v18 = vadd.f32 %v2727_v61, %v337_v42  ;;  %v502_v40 = vsub.f32 %v3740_v3, %v4990_v21  ;;  %v726_v60 = vsub.f32 %v3747_v52, %v4992_v2  ;;  %v2728_v21 = vld [vmem:[%s3665_s7 + $0x38] sm:$0xff] }
  0x52   : > { %v715_v39 = vand.u32 4294901760, %v714_v49  ;;  %v356_v5 = vadd.f32 %v2730_v32, %v346_v63  ;;  %v721_v45 = vand.u32 4294901760, %v720_v54  ;;  %v732_v0 = vsub.f32 %v3757_v4, %v4991_v6  ;;  %v5206_v6 = vld [vmem:[#allocation22_spill] sm:$0xff] }
  0x53   : > { %710 = vmatpush1.msra.mxu1 %v709_v26  ;;  %v503_v49 = vand.u32 4294901760, %v502_v40  ;;  %v727_v20 = vand.u32 4294901760, %v726_v60  ;;  %v357_v42 = vadd.f32 %v2731_v11, %v347_v18  ;;  %v348_v63 = vadd.f32 %v2728_v21, %v338_v31  ;;  %v2732_v11 = vld [vmem:[%s3665_s7 + $0x58] sm:$0xff] }
  0x54   : > { %716 = vmatprep.subr.mxu1 %v715_v39  ;;  %v3776_v61 = vand.u32 4294901760, %v356_v5  ;;  %v733_v26 = vand.u32 4294901760, %v732_v0 }
  0x55   : > { %722 = vmatpush1.msra.mxu1 %v721_v45  ;;  %504 = vmatmul.mubr.f32.vlgmr.msra.gmra.mxu0 %v503_v49  ;;  %v3786_v39 = vand.u32 4294901760, %v357_v42  ;;  %v358_v21 = vadd.f32 %v2732_v11, %v348_v63  ;;  %v5200_v45 = vmov 0.0   ;;  %v5201_v49 = vld [vmem:[#allocation4_spill] sm:$0xff]  ;;  %v5203_v63 = vld [vmem:[#allocation5_spill] sm:$0xff] }
  0x56   : > { %5197 = vst [vmem:[#allocation29_spill] sm:$0xff] %v3776_v61  ;;  %728 = vmatprep.subr.mxu1 %v727_v20  ;;  %v3781_v32 = vsub.f32 %v356_v5, %v3776_v61  ;;  %801 = vmatpush1.msra.mxu0 %v3312_v36 }
  0x57   : > { %734 = vmatpush1.msra.mxu1 %v733_v26  ;;  %804 = vmatprep.subr.mxu0 %v3318_v38  ;;  %5198 = vst [vmem:[#allocation30_spill] sm:$0xff] %v3786_v39  ;;  %v3799_v31 = vsub.f32 %v357_v42, %v3786_v39  ;;  %v3810_v18 = vand.u32 4294901760, %v358_v21  ;;  %v5202_v26 = vld [vmem:[#allocation18_spill] sm:$0xff] }
  0x58   : > { %769 = vmatmul.mubr.f32.vlgmr.msra.gmra.mxu1 %v3723_v50  ;;  %807 = vmatpush1.msra.mxu0 %v3341_v44  ;;  %v4994_v20 = vand.u32 4294901760, %v3781_v32  ;;  %v5210_v50 = vld [vmem:[#allocation10_spill] sm:$0xff] }
  0x59   : > { %958 = vmatprep.subr.mxu1 %v3250_v15  ;;  %810 = vmatprep.subr.mxu0 %v3350_v48  ;;  %5199 = vst [vmem:[#allocation31_spill] sm:$0xff] %v3810_v18  ;;  %v4993_v40 = vand.u32 4294901760, %v3799_v31  ;;  %v3822_v5 = vsub.f32 %v358_v21, %v3810_v18  ;;  %v5204_v21 = vld [vmem:[#allocation20_spill] sm:$0xff] }
  0x5a   : > { %960 = vmatpush1.msra.mxu1 %v3252_v16  ;;  %813 = vmatpush1.msra.mxu0 %v3366_v53  ;;  %v513_v54 = vsub.f32 %v3781_v32, %v4994_v20 }
  0x5b   : > { %962 = vmatprep.subr.mxu1 %v3254_v17  ;;  %816 = vmatprep.subr.mxu0 %v3380_v58  ;;  %v524_v0 = vsub.f32 %v3799_v31, %v4993_v40  ;;  %v4997_v42 = vand.u32 4294901760, %v3822_v5  ;;  %v5209_v40 = vld [vmem:[#allocation9_spill] sm:$0xff] }
  0x5c   : > { %964 = vmatpush1.msra.mxu1 %v3267_v22  ;;  %819 = vmatpush1.msra.mxu0 %v3415_v8  ;;  %v514_v60 = vand.u32 4294901760, %v513_v54  ;;  %v5205_v54 = vld [vmem:[#allocation6_spill] sm:$0xff] }
  0x5d   : > { %966 = vmatprep.subr.mxu1 %v3269_v23  ;;  %822 = vmatprep.subr.mxu0 %v3430_v13  ;;  %v525_v11 = vand.u32 4294901760, %v524_v0  ;;  %v535_v2 = vsub.f32 %v3822_v5, %v4997_v42  ;;  %v5208_v0 = vld [vmem:[#allocation8_spill] sm:$0xff] }
  0x5e   : > { %968 = vmatpush1.msra.mxu1 %v3271_v24  ;;  %825 = vmatpush1.msra.mxu0 %v3444_v25  ;;  %v5212_v42 = vld [vmem:[#allocation12_spill] sm:$0xff] }
  0x5f   : > { %970 = vmatprep.subr.mxu1 %v3283_v28  ;;  %828 = vmatprep.subr.mxu0 %v3458_v56  ;;  %v536_v20 = vand.u32 4294901760, %v535_v2  ;;  %v5213_v2 = vld [vmem:[#allocation13_spill] sm:$0xff] }
  0x60   : > { %972 = vmatpush1.msra.mxu1 %v3285_v29  ;;  %831 = vmatpush1.msra.mxu0 %v3470_v1 }
  0x61   : > { %974 = vmatprep.subr.mxu1 %v3287_v30  ;;  %834 = vmatprep.subr.mxu0 %v3487_v34 }
  0x62   : > { %976 = vmatpush1.msra.mxu1 %v3309_v35  ;;  %837 = vmatpush1.msra.mxu0 %v3499_v55 }
  0x63   : > { %978 = vmatprep.subr.mxu1 %v3315_v37  ;;  %840 = vmatprep.subr.mxu0 %v3526_v62 }
  0x64   : > { %509 = vmatprep.mubr.f32.mxu0 %v5200_v45  ;;  %843 = vmatpush1.msra.mxu0 %v3543_v41 }
  0x65   : > { %980 = vmatpush1.msra.mxu1 %v3338_v43  ;;  %846 = vmatprep.subr.mxu0 %v3567_v46 }
  0x66   : > { %515 = vmatmul.mubr.f32.gmra.mxu0 %v514_v60  ;;  %982 = vmatprep.subr.mxu1 %v5201_v49  ;;  %v5207_v60 = vld [vmem:[#allocation7_spill] sm:$0xff] }
  0x67   : > { %849 = vmatpush1.msra.mxu0 %v3585_v59  ;;  %984 = vmatpush1.msra.mxu1 %v5203_v63 }
  0x68   : > { %852 = vmatprep.subr.mxu0 %v5202_v26  ;;  %986 = vmatprep.subr.mxu1 %v5205_v54 }
  0x69   : > { %855 = vmatpush1.msra.mxu0 %v5204_v21  ;;  %520 = vmatprep.mubr.f32.mxu0 %v5200_v45 }
  0x6a   : > { %858 = vmatprep.subr.mxu0 %v5206_v6  ;;  %988 = vmatpush1.msra.mxu1 %v5207_v60 }
  0x6b   : > { %861 = vmatpush1.msra.mxu0 %v3640_v14  ;;  %990 = vmatprep.subr.mxu1 %v5208_v0 }
  0x6c   : > { %864 = vmatprep.subr.mxu0 %v3662_v12  ;;  %526 = vmatmul.mubr.f32.gmra.mxu0 %v525_v11  ;;  %v5211_v11 = vld [vmem:[#allocation11_spill] sm:$0xff] }
  0x6d   : > { %867 = vmatpush1.msra.mxu0 %v3678_v33  ;;  %992 = vmatpush1.msra.mxu1 %v5209_v40 }
  0x6e   : > { %870 = vmatprep.subr.mxu0 %v3687_v9  ;;  %774 = vmatprep.mubr.f32.mxu1 %v5200_v45 }
  0x6f   : > { %873 = vmatpush1.msra.mxu0 %v3694_v27  ;;  %994 = vmatprep.subr.mxu1 %v5210_v50  ;;  %v5214_v50 = vld [vmem:[#allocation14_spill] sm:$0xff] }
  0x70   : > { %876 = vmatprep.subr.mxu0 %v3703_v7  ;;  %531 = vmatprep.mubr.f32.mxu0 %v5200_v45 }
  0x71   : > { %776 = vmatmul.mubr.f32.gmra.mxu1 %v3776_v61  ;;  %879 = vmatpush1.msra.mxu0 %v3712_v51 }
  0x72   : > { %996 = vmatpush1.msra.mxu1 %v5211_v11  ;;  %537 = vmatmul.mubr.f32.gmra.mxu0 %v536_v20  ;;  %v5215_v20 = vld [vmem:[#allocation3_spill] sm:$0xff] }
  0x73   : > { %882 = vmatprep.subr.mxu0 %v3721_v10  ;;  %998 = vmatprep.subr.mxu1 %v5212_v42  ;;  %v5216_v61 = vand.u32 4294901760, %v5215_v20  ;;  %v5225_v20 = vld [vmem:[#allocation23_spill] sm:$0xff] }
  0x74   : > { %885 = vmatpush1.msra.mxu0 %v3735_v57  ;;  %1000 = vmatpush1.msra.mxu1 %v5213_v2  ;;  %v5217_v2 = vld [vmem:[#allocation16_spill] sm:$0xff] }
  0x75   : > { %781 = vmatprep.mubr.f32.mxu1 %v5200_v45  ;;  %888 = vmatprep.subr.mxu0 %v3747_v52  ;;  %v5218_v52 = vand.u32 4294901760, %v3312_v36  ;;  %v5223_v36 = vld [vmem:[#allocation21_spill] sm:$0xff] }
  0x76   : > { %1002 = vmatprep.subr.mxu1 %v5214_v50  ;;  %783 = vmatmul.mubr.f32.gmra.mxu1 %v3786_v39  ;;  %v5219_v39 = vld [vmem:[#allocation17_spill] sm:$0xff] }
  0x77   : > { %891 = vmatpush1.msra.mxu0 %v3757_v4  ;;  %924 = vmatprep.mubr.f32.mxu0 %v5200_v45  ;;  %v5220_v4 = vand.u32 4294901760, %v3318_v38  ;;  %v5226_v38 = vand.u32 4294901760, %v3366_v53  ;;  %v5232_v53 = vand.u32 4294901760, %v3430_v13  ;;  %v5239_v13 = vand.u32 4294901760, %v3526_v62 }
  0x78   : > { %1004 = vmatpush1.msra.mxu1 %v3539_v19  ;;  %927 = vmatmul.mubr.f32.vlgmr.msra.gmra.mxu0 %v3740_v3  ;;  %v5251_v62 = vand.u32 4294901760, %v3687_v9 }
  0x79   : > { %1006 = vmatprep.subr.mxu1 %v3556_v47  ;;  %1093 = vmatprep.subr.mxu0 %v5216_v61  ;;  %v5221_v47 = vld [vmem:[#allocation19_spill] sm:$0xff]  ;;  %v5222_v61 = vand.u32 4294901760, %v3341_v44  ;;  %v5229_v44 = vld [vmem:[#allocation25_spill] sm:$0xff] }
  0x7a   : > { %1008 = vmatpush1.msra.mxu1 %v5217_v2  ;;  %1097 = vmatpush1.msra.mxu0 %v5218_v52  ;;  %v5224_v52 = vand.u32 4294901760, %v3350_v48  ;;  %v5231_v48 = vand.u32 4294901760, %v3740_v3  ;;  %v5265_v3 = vld [vmem:[#allocation29_spill] sm:$0xff] }
  0x7b   : > { %788 = vmatprep.mubr.f32.mxu1 %v5200_v45  ;;  %1010 = vmatprep.subr.mxu1 %v5219_v39 }
  0x7c   : > { %1101 = vmatprep.subr.mxu0 %v5220_v4  ;;  %790 = vmatmul.mubr.f32.gmra.mxu1 %v3810_v18  ;;  %v5227_v4 = vld [vmem:[#allocation24_spill] sm:$0xff]  ;;  %v5228_v18 = vand.u32 4294901760, %v3380_v58  ;;  %v5233_v58 = vand.u32 4294901760, %v3444_v25  ;;  %v5241_v25 = vand.u32 4294901760, %v3799_v31 }
  0x7d   : > { %932 = vmatprep.mubr.f32.mxu0 %v5200_v45  ;;  %1012 = vmatpush1.msra.mxu1 %v5221_v47 }
  0x7e   : > { %1105 = vmatpush1.msra.mxu0 %v5222_v61  ;;  %1014 = vmatprep.subr.mxu1 %v5223_v36  ;;  %v5230_v61 = vand.u32 4294901760, %v3415_v8  ;;  %v5235_v8 = vand.u32 4294901760, %v3470_v1  ;;  %v5254_v1 = vld [vmem:[#allocation10_spill] sm:$0xff] }
  0x7f   : > { %935 = vmatmul.mubr.f32.gmra.mxu0 %v3781_v32  ;;  %1109 = vmatprep.subr.mxu0 %v5224_v52 }
  0x80   : > { %1016 = vmatpush1.msra.mxu1 %v5225_v20  ;;  %1113 = vmatpush1.msra.mxu0 %v5226_v38  ;;  %v1560_v38 = vld [vmem:[%s4919_s3 + $0x60] sm:$0xff] }
  0x81   : > { %1018 = vmatprep.subr.mxu1 %v5227_v4  ;;  %1117 = vmatprep.subr.mxu0 %v5228_v18  ;;  %v5234_v18 = vand.u32 4294901760, %v3458_v56  ;;  %v5253_v56 = vand.u32 4294901760, %v3703_v7  ;;  %v5264_v7 = vld [vmem:[#allocation15_spill] sm:$0xff] }
  0x82   : > { %940 = vmatprep.mubr.f32.mxu0 %v5200_v45  ;;  %1020 = vmatpush1.msra.mxu1 %v5229_v44 }
  0x83   : > { %1053 = vmatprep.mubr.f32.mxu1 %v5200_v45  ;;  %1121 = vmatpush1.msra.mxu0 %v5230_v61 }
  0x84   : > { %1057 = vmatmul.mubr.f32.vlgmr.msra.gmra.mxu1 %v5231_v48  ;;  %943 = vmatmul.mubr.f32.gmra.mxu0 %v3799_v31  ;;  %v4082_v48 = vand.u32 4294901760, %v1560_v38 }
  0x85   : > { %1125 = vmatprep.subr.mxu0 %v5232_v53  ;;  %1280 = vmatprep.subr.mxu1 %v3250_v15  ;;  %v5236_v15 = vand.u32 4294901760, %v3781_v32  ;;  %v1578_v32 = vld [vmem:[%s4919_s3 + $0xf0] sm:$0xff]  ;;  %v1575_v53 = vld [vmem:[%s4919_s3 + $0xd8] sm:$0xff] }
  0x86   : > { %1129 = vmatpush1.msra.mxu0 %v5233_v58  ;;  %1282 = vmatpush1.msra.mxu1 %v3252_v16  ;;  %v5237_v16 = vand.u32 4294901760, %v3487_v34  ;;  %v5256_v34 = vand.u32 4294901760, %v3721_v10  ;;  %v4027_v31 = vand.u32 4294901760, %v1578_v32 }
  0x87   : > { %1133 = vmatprep.subr.mxu0 %v5234_v18  ;;  %1284 = vmatprep.subr.mxu1 %v3254_v17  ;;  %v5238_v17 = vand.u32 4294901760, %v3499_v55  ;;  %v5252_v55 = vand.u32 4294901760, %v3694_v27  ;;  %v5263_v27 = vld [vmem:[#allocation26_spill] sm:$0xff] }
  0x88   : > { %948 = vmatprep.mubr.f32.mxu0 %v5200_v45  ;;  %1062 = vmatprep.mubr.f32.mxu1 %v5200_v45 }
  0x89   : > { %1137 = vmatpush1.msra.mxu0 %v5235_v8  ;;  %1286 = vmatpush1.msra.mxu1 %v3267_v22  ;;  %v5240_v22 = vand.u32 4294901760, %v3543_v41  ;;  %v5257_v41 = vand.u32 4294901760, %v3735_v57 }
  0x8a   : > { %951 = vmatmul.mubr.f32.gmra.mxu0 %v3822_v5  ;;  %1066 = vmatmul.mubr.f32.gmra.mxu1 %v5236_v15 }
  0x8b   : > { %1141 = vmatprep.subr.mxu0 %v5237_v16  ;;  %1288 = vmatprep.subr.mxu1 %v3269_v23  ;;  %v5242_v23 = vand.u32 4294901760, %v3567_v46  ;;  %v5246_v46 = vand.u32 4294901760, %v3822_v5  ;;  %v1559_v16 = vld [vmem:[%s4919_s3 + $0x58] sm:$0xff] }
  0x8c   : > { %1145 = vmatpush1.msra.mxu0 %v5238_v17  ;;  %1290 = vmatpush1.msra.mxu1 %v3271_v24  ;;  %v5243_v24 = vand.u32 4294901760, %v3585_v59  ;;  %v5258_v59 = vld [vmem:[#allocation13_spill] sm:$0xff] }
  0x8d   : > { %1149 = vmatprep.subr.mxu0 %v5239_v13  ;;  %1292 = vmatprep.subr.mxu1 %v3283_v28  ;;  %v5244_v28 = vand.u32 4294901760, %v5202_v26  ;;  %v4044_v26 = vsub.f32 %v1578_v32, %v4027_v31 }
  0x8e   : > { %1071 = vmatprep.mubr.f32.mxu1 %v5200_v45  ;;  %1153 = vmatpush1.msra.mxu0 %v5240_v22 }
  0x8f   : > { %1294 = vmatpush1.msra.mxu1 %v3285_v29  ;;  %1157 = vmatprep.subr.mxu0 %v5242_v23  ;;  %v5245_v29 = vand.u32 4294901760, %v5204_v21  ;;  %5270 = vst [vmem:[#allocation5_spill] sm:$0xff] %v4044_v26  ;;  %v1561_v21 = vld [vmem:[%s4919_s3 + $0x68] sm:$0xff]  ;;  %v1574_v23 = vld [vmem:[%s4919_s3 + $0xd0] sm:$0xff] }
  0x90   : > { %1075 = vmatmul.mubr.f32.gmra.mxu1 %v5241_v25  ;;  %1296 = vmatprep.subr.mxu1 %v3287_v30  ;;  %v5247_v30 = vand.u32 4294901760, %v5206_v6  ;;  %v5255_v6 = vand.u32 4294901760, %v3712_v51  ;;  %v1579_v51 = vld [vmem:[%s4919_s3 + $0xf8] sm:$0xff]  ;;  %v4104_v25 = vsub.f32 %v1560_v38, %v4082_v48 }
  0x91   : > { %1161 = vmatpush1.msra.mxu0 %v5243_v24  ;;  %1298 = vmatpush1.msra.mxu1 %v3309_v35  ;;  %v5248_v35 = vand.u32 4294901760, %v3640_v14  ;;  %v5259_v14 = vld [vmem:[#allocation27_spill] sm:$0xff]  ;;  %v4014_v10 = vand.u32 4294901760, %v1579_v51 }
  0x92   : > { %1165 = vmatprep.subr.mxu0 %v5244_v28  ;;  %1300 = vmatprep.subr.mxu1 %v3315_v37  ;;  %v5249_v37 = vand.u32 4294901760, %v3662_v12  ;;  %v5260_v12 = vand.u32 4294901760, %v5259_v14  ;;  %5275 = vst [vmem:[#allocation8_spill] sm:$0xff] %v4104_v25 }
  0x93   : > { %1080 = vmatprep.mubr.f32.mxu1 %v5200_v45  ;;  %1169 = vmatpush1.msra.mxu0 %v5245_v29  ;;  %5268 = vst [vmem:[#allocation4_spill] sm:$0xff] %v4014_v10 }
  0x94   : > { %1302 = vmatpush1.msra.mxu1 %v3338_v43  ;;  %1173 = vmatprep.subr.mxu0 %v5247_v30  ;;  %v5250_v43 = vand.u32 4294901760, %v3678_v33  ;;  %v5261_v33 = vld [vmem:[#allocation28_spill] sm:$0xff]  ;;  %v1558_v30 = vld [vmem:[%s4919_s3 + $0x50] sm:$0xff] }
  0x95   : > { %1084 = vmatmul.mubr.f32.gmra.mxu1 %v5246_v46  ;;  %1304 = vmatprep.subr.mxu1 %v5201_v49  ;;  %v5262_v9 = vand.u32 4294901760, %v5261_v33  ;;  %v1577_v49 = vld [vmem:[%s4919_s3 + $0xe8] sm:$0xff]  ;;  %v4114_v46 = vand.u32 4294901760, %v1575_v53  ;;  %v4146_v33 = vand.u32 4294901760, %v1558_v30 }
  0x96   : > { %1177 = vmatpush1.msra.mxu0 %v5248_v35  ;;  %1306 = vmatpush1.msra.mxu1 %v5203_v63  ;;  %v4046_v63 = vand.u32 4294901760, %v1577_v49 }
  0x97   : > { %1181 = vmatprep.subr.mxu0 %v5249_v37  ;;  %1308 = vmatprep.subr.mxu1 %v5205_v54  ;;  %5279 = vst [vmem:[#allocation14_spill] sm:$0xff] %v4146_v33  ;;  %v4164_v32 = vsub.f32 %v1558_v30, %v4146_v33 }
  0x98   : > { %1185 = vmatpush1.msra.mxu0 %v5250_v43  ;;  %1310 = vmatpush1.msra.mxu1 %v5207_v60  ;;  %v4067_v52 = vsub.f32 %v1577_v49, %v4046_v63  ;;  %v5016_v43 = vand.u32 4294901760, %v4104_v25 }
  0x99   : > { %1189 = vmatprep.subr.mxu0 %v5251_v62  ;;  %1312 = vmatprep.subr.mxu1 %v5208_v0  ;;  %v4056_v0 = vand.u32 4294901760, %v1561_v21  ;;  %v4123_v62 = vand.u32 4294901760, %v1559_v16  ;;  %5282 = vst [vmem:[#allocation17_spill] sm:$0xff] %v4164_v32 }
  0x9a   : > { %1193 = vmatpush1.msra.mxu0 %v5252_v55  ;;  %1314 = vmatpush1.msra.mxu1 %v5209_v40  ;;  %v1562_v40 = vld [vmem:[%s4919_s3 + $0x70] sm:$0xff]  ;;  %5272 = vst [vmem:[#allocation6_spill] sm:$0xff] %v4067_v52  ;;  %v5020_v8 = vand.u32 4294901760, %v4067_v52  ;;  %v1573_v55 = vld [vmem:[%s4919_s3 + $0xc8] sm:$0xff]  ;;  %v1768_v14 = vsub.f32 %v4104_v25, %v5016_v43 }
  0x9b   : > { %1197 = vmatprep.subr.mxu0 %v5253_v56  ;;  %1316 = vmatprep.subr.mxu1 %v5254_v1  ;;  %v4080_v61 = vsub.f32 %v1561_v21, %v4056_v0 }
  0x9c   : > { %1201 = vmatpush1.msra.mxu0 %v5255_v6  ;;  %1318 = vmatpush1.msra.mxu1 %v5211_v11  ;;  %v1576_v11 = vld [vmem:[%s4919_s3 + $0xe0] sm:$0xff]  ;;  %v1873_v28 = vsub.f32 %v4067_v52, %v5020_v8  ;;  %v4132_v6 = vsub.f32 %v1575_v53, %v4114_v46 }
  0x9d   : > { %1205 = vmatprep.subr.mxu0 %v5256_v34  ;;  %1320 = vmatprep.subr.mxu1 %v5212_v42  ;;  %5273 = vst [vmem:[#allocation22_spill] sm:$0xff] %v4080_v61  ;;  %v5019_v22 = vand.u32 4294901760, %v4080_v61  ;;  %v4134_v34 = vand.u32 4294901760, %v1574_v23 }
  0x9e   : > { %1209 = vmatpush1.msra.mxu0 %v5257_v41  ;;  %1322 = vmatpush1.msra.mxu1 %v5258_v59  ;;  %v1874_v56 = vand.u32 4294901760, %v1873_v28  ;;  %5276 = vst [vmem:[#allocation9_spill] sm:$0xff] %v4132_v6  ;;  %v1557_v41 = vld [vmem:[%s4919_s3 + $0x48] sm:$0xff] }
  0x9f   : > { %1213 = vmatprep.subr.mxu0 %v5260_v12  ;;  %1324 = vmatprep.subr.mxu1 %v5214_v50  ;;  %v1563_v50 = vld [vmem:[%s4919_s3 + $0x78] sm:$0xff]  ;;  %v1761_v37 = vsub.f32 %v4080_v61, %v5019_v22  ;;  %5277 = vst [vmem:[#allocation11_spill] sm:$0xff] %v4134_v34  ;;  %v4144_v12 = vsub.f32 %v1559_v16, %v4123_v62 }
  0xa0   : > { %1217 = vmatpush1.msra.mxu0 %v5262_v9  ;;  %1250 = vmatprep.mubr.f32.mxu0 %v5200_v45  ;;  %v4019_v57 = vand.u32 4294901760, %v1563_v50  ;;  %v1572_v9 = vld [vmem:[%s4919_s3 + $0xc0] sm:$0xff] }
  0xa1   : > { %1326 = vmatpush1.msra.mxu1 %v3539_v19  ;;  %1252 = vmatmul.mubr.f32.vlgmr.msra.gmra.mxu0 %v5263_v27  ;;  %v5266_v19 = vld [vmem:[#allocation30_spill] sm:$0xff]  ;;  %v1762_v59 = vand.u32 4294901760, %v1761_v37  ;;  %5278 = vst [vmem:[#allocation12_spill] sm:$0xff] %v4144_v12 }
  0xa2   : > { %1328 = vmatprep.subr.mxu1 %v5264_v7  ;;  %1257 = vmatprep.mubr.f32.mxu0 %v5200_v45  ;;  %v4034_v5 = vsub.f32 %v1563_v50, %v4019_v57  ;;  %v5014_v7 = vand.u32 4294901760, %v4132_v6  ;;  %v5013_v50 = vand.u32 4294901760, %v4144_v12 }
  0xa3   : > { %1330 = vmatpush1.msra.mxu1 %v5217_v2  ;;  %1375 = vmatprep.mubr.f32.mxu1 %v5200_v45 }
  0xa4   : > { %1332 = vmatprep.subr.mxu1 %v5219_v39  ;;  %v4025_v39 = vsub.f32 %v1579_v51, %v4014_v10  ;;  %2736 = vmatprep.subr.mxu0 %v4014_v10  ;;  %v5025_v54 = vand.u32 4294901760, %v4034_v5  ;;  %v1769_v51 = vand.u32 4294901760, %v1768_v14  ;;  %v1887_v49 = vsub.f32 %v4132_v6, %v5014_v7  ;;  %v1554_v14 = vld [vmem:[%s4919_s3 + $0x30] sm:$0xff] }
  0xa5   : > { %1334 = vmatpush1.msra.mxu1 %v5221_v47  ;;  %1259 = vmatmul.mubr.f32.gmra.mxu0 %v5265_v3  ;;  %v5267_v47 = vld [vmem:[#allocation31_spill] sm:$0xff]  ;;  %v1775_v38 = vsub.f32 %v4144_v12, %v5013_v50 }
  0xa6   : > { %1336 = vmatprep.subr.mxu1 %v5223_v36  ;;  %1264 = vmatprep.mubr.f32.mxu0 %v5200_v45  ;;  %5269 = vst [vmem:[#allocation18_spill] sm:$0xff] %v4025_v39  ;;  %v5026_v42 = vand.u32 4294901760, %v4025_v39  ;;  %v5023_v36 = vand.u32 4294901760, %v4044_v26  ;;  %v1888_v16 = vand.u32 4294901760, %v1887_v49  ;;  %v1569_v49 = vld [vmem:[%s4919_s3 + $0xa8] sm:$0xff] }
  0xa7   : > { %1338 = vmatpush1.msra.mxu1 %v5225_v20  ;;  %2737 = vmatpush3.msra.mxu0 %v4019_v57  ;;  %v4069_v20 = vand.u32 4294901760, %v1576_v11  ;;  %v1776_v28 = vand.u32 4294901760, %v1775_v38 }
  0xa8   : > { %1340 = vmatprep.subr.mxu1 %v5227_v4  ;;  %2738 = vmatprep.subr.mxu0 %v4027_v31  ;;  %v1859_v2 = vsub.f32 %v4025_v39, %v5026_v42  ;;  %v1747_v4 = vsub.f32 %v4034_v5, %v5025_v54  ;;  %v1866_v18 = vsub.f32 %v4044_v26, %v5023_v36 }
  0xa9   : > { %1342 = vmatpush1.msra.mxu1 %v5229_v44  ;;  %1266 = vmatmul.mubr.f32.gmra.mxu0 %v5266_v19  ;;  %v4093_v15 = vsub.f32 %v1576_v11, %v4069_v20 }
  0xaa   : > { %1377 = vmatmul.mubr.f32.vlgmr.msra.gmra.mxu1 %v5263_v27  ;;  %1271 = vmatprep.mubr.f32.mxu0 %v5200_v45  ;;  %v1860_v58 = vand.u32 4294901760, %v1859_v2  ;;  %v1748_v17 = vand.u32 4294901760, %v1747_v4  ;;  %v1867_v24 = vand.u32 4294901760, %v1866_v18  ;;  %v4176_v2 = vand.u32 4294901760, %v1572_v9  ;;  %v1571_v18 = vld [vmem:[%s4919_s3 + $0xb8] sm:$0xff] }
  0xab   : > { %1382 = vmatprep.mubr.f32.mxu1 %v5200_v45  ;;  %5274 = vst [vmem:[#allocation7_spill] sm:$0xff] %v4093_v15  ;;  %v5018_v29 = vand.u32 4294901760, %v4093_v15  ;;  %v5010_v4 = vand.u32 4294901760, %v4164_v32 }
  0xac   : > { %2780 = vmatprep.subr.mxu1 %v1860_v58  ;;  %5285 = vst [vmem:[#allocation23_spill] sm:$0xff] %v4176_v2 }
  0xad   : > { %1273 = vmatmul.mubr.f32.gmra.mxu0 %v5267_v47  ;;  %2781 = vmatpush3.msra.mxu1 %v1748_v17  ;;  %v1880_v1 = vsub.f32 %v4093_v15, %v5018_v29  ;;  %v1782_v30 = vsub.f32 %v4164_v32, %v5010_v4  ;;  %v4260_v4 = vand.u32 4294901760, %v1569_v49 }
  0xae   : > { %1384 = vmatmul.mubr.f32.gmra.mxu1 %v5265_v3  ;;  %2782 = vmatprep.subr.mxu1 %v1867_v24  ;;  %v4154_v3 = vsub.f32 %v1574_v23, %v4134_v34  ;;  %v4197_v23 = vsub.f32 %v1572_v9, %v4176_v2  ;;  %v1555_v24 = vld [vmem:[%s4919_s3 + $0x38] sm:$0xff] }
  0xaf   : > { %1389 = vmatprep.mubr.f32.mxu1 %v5200_v45  ;;  %v1881_v27 = vand.u32 4294901760, %v1880_v1  ;;  %v1783_v9 = vand.u32 4294901760, %v1782_v30  ;;  %v1553_v30 = vld [vmem:[%s4919_s3 + $0x28] sm:$0xff]  ;;  %5297 = vst [vmem:[#allocation32_spill] sm:$0xff] %v4260_v4  ;;  %v4278_v7 = vsub.f32 %v1569_v49, %v4260_v4  ;;  %v1567_v49 = vld [vmem:[%s4919_s3 + $0x98] sm:$0xff] }
  0xb0   : > { %5280 = vst [vmem:[#allocation3_spill] sm:$0xff] %v4154_v3  ;;  %v5012_v21 = vand.u32 4294901760, %v4154_v3  ;;  %5288 = vst [vmem:[#allocation10_spill] sm:$0xff] %v4197_v23 }
  0xb1   : > { %5300 = vst [vmem:[#allocation35_spill] sm:$0xff] %v4278_v7 }
  0xb2   : > { %1391 = vmatmul.mubr.f32.gmra.mxu1 %v5266_v19  ;;  %v4156_v19 = vand.u32 4294901760, %v1573_v55  ;;  %v1894_v17 = vsub.f32 %v4154_v3, %v5012_v21 }
  0xb3   : > { %1396 = vmatprep.mubr.f32.mxu1 %v5200_v45  ;;  %v4036_v45 = vand.u32 4294901760, %v1562_v40 }
  0xb4   : > { %5281 = vst [vmem:[#allocation16_spill] sm:$0xff] %v4156_v19  ;;  %v4174_v11 = vsub.f32 %v1573_v55, %v4156_v19  ;;  %v1570_v55 = vld [vmem:[%s4919_s3 + $0xb0] sm:$0xff] }
  0xb5   : > { %v4054_v60 = vsub.f32 %v1562_v40, %v4036_v45  ;;  %2739 = vmatpush3.msra.mxu0 %v4036_v45  ;;  %v4166_v40 = vand.u32 4294901760, %v1557_v41 }
  0xb6   : > { %1398 = vmatmul.mubr.f32.gmra.mxu1 %v5267_v47  ;;  %2740 = vmatprep.subr.mxu0 %v4046_v63  ;;  %v1556_v47 = vld [vmem:[%s4919_s3 + $0x40] sm:$0xff]  ;;  %5284 = vst [vmem:[#allocation21_spill] sm:$0xff] %v4174_v11 }
  0xb7   : > { %5271 = vst [vmem:[#allocation20_spill] sm:$0xff] %v4054_v60  ;;  %v5022_v44 = vand.u32 4294901760, %v4054_v60  ;;  %2741 = vmatpush3.msra.mxu0 %v4056_v0  ;;  %5283 = vst [vmem:[#allocation19_spill] sm:$0xff] %v4166_v40  ;;  %v4184_v53 = vsub.f32 %v1557_v41, %v4166_v40  ;;  %v4186_v58 = vand.u32 4294901760, %v1556_v47  ;;  %v5008_v41 = vand.u32 4294901760, %v4197_v23 }
  0xb8   : > { %2742 = vmatprep.subr.mxu0 %v4069_v20 }
  0xb9   : > { %v1754_v13 = vsub.f32 %v4054_v60, %v5022_v44  ;;  %2743 = vmatpush3.msra.mxu0 %v4082_v48  ;;  %5286 = vst [vmem:[#allocation24_spill] sm:$0xff] %v4184_v53  ;;  %5287 = vst [vmem:[#allocation25_spill] sm:$0xff] %v4186_v58  ;;  %v4208_v37 = vsub.f32 %v1556_v47, %v4186_v58 }
  0xba   : > { %2744 = vmatprep.subr.mxu0 %v4114_v46 }
  0xbb   : > { %v1755_v35 = vand.u32 4294901760, %v1754_v13  ;;  %2745 = vmatpush3.msra.mxu0 %v4123_v62  ;;  %v5009_v13 = vand.u32 4294901760, %v4174_v11  ;;  %5289 = vst [vmem:[#allocation13_spill] sm:$0xff] %v4208_v37  ;;  %v5011_v47 = vand.u32 4294901760, %v4208_v37 }
  0xbc   : > { %2746 = vmatprep.subr.mxu0 %v4134_v34 }
  0xbd   : > { %2783 = vmatpush3.msra.mxu1 %v1755_v35  ;;  %2747 = vmatpush3.msra.mxu0 %v4146_v33  ;;  %v5007_v35 = vand.u32 4294901760, %v4184_v53  ;;  %v1901_v1 = vsub.f32 %v4174_v11, %v5009_v13 }
  0xbe   : > { %2784 = vmatprep.subr.mxu1 %v1874_v56  ;;  %2748 = vmatprep.subr.mxu0 %v4156_v19  ;;  %v1895_v56 = vand.u32 4294901760, %v1894_v17 }
  0xbf   : > { %2785 = vmatpush3.msra.mxu1 %v1762_v59  ;;  %2749 = vmatpush3.msra.mxu0 %v4166_v40  ;;  %v4218_v59 = vand.u32 4294901760, %v1571_v18  ;;  %v1902_v38 = vand.u32 4294901760, %v1901_v1 }
  0xc0   : > { %2786 = vmatprep.subr.mxu1 %v1881_v27  ;;  %2750 = vmatprep.subr.mxu0 %v4176_v2  ;;  %v1789_v27 = vsub.f32 %v4184_v53, %v5007_v35 }
  0xc1   : > { %2787 = vmatpush3.msra.mxu1 %v1769_v51  ;;  %2751 = vmatpush3.msra.mxu0 %v4186_v58  ;;  %5290 = vst [vmem:[#allocation27_spill] sm:$0xff] %v4218_v59  ;;  %v4227_v51 = vand.u32 4294901760, %v1555_v24  ;;  %v4236_v17 = vsub.f32 %v1571_v18, %v4218_v59  ;;  %v1568_v18 = vld [vmem:[%s4919_s3 + $0xa0] sm:$0xff] }
  0xc2   : > { %2788 = vmatprep.subr.mxu1 %v1888_v16  ;;  %v1908_v16 = vsub.f32 %v4197_v23, %v5008_v41  ;;  %2752 = vmatprep.subr.mxu0 %v4218_v59  ;;  %v1790_v35 = vand.u32 4294901760, %v1789_v27  ;;  %v4250_v41 = vand.u32 4294901760, %v1554_v14 }
  0xc3   : > { %2789 = vmatpush3.msra.mxu1 %v1776_v28  ;;  %5291 = vst [vmem:[#allocation28_spill] sm:$0xff] %v4227_v51  ;;  %5292 = vst [vmem:[#allocation26_spill] sm:$0xff] %v4236_v17  ;;  %v4238_v28 = vand.u32 4294901760, %v1570_v55  ;;  %v4248_v1 = vsub.f32 %v1555_v24, %v4227_v51  ;;  %2753 = vmatpush3.msra.mxu0 %v4227_v51  ;;  %v1552_v24 = vld [vmem:[%s4919_s3 + $0x20] sm:$0xff] }
  0xc4   : > { %2790 = vmatprep.subr.mxu1 %v1895_v56  ;;  %v1796_v56 = vsub.f32 %v4208_v37, %v5011_v47  ;;  %5295 = vst [vmem:[#allocation30_spill] sm:$0xff] %v4250_v41  ;;  %v1909_v13 = vand.u32 4294901760, %v1908_v16  ;;  %v4270_v16 = vand.u32 4294901760, %v1553_v30  ;;  %v333_v37 = vld [vmem:[%s4918_s2] sm:$0x3] }
  0xc5   : > { %5293 = vst [vmem:[#allocation15_spill] sm:$0xff] %v4238_v28  ;;  %2791 = vmatpush3.msra.mxu1 %v1783_v9  ;;  %5294 = vst [vmem:[#allocation29_spill] sm:$0xff] %v4248_v1  ;;  %v5015_v9 = vand.u32 4294901760, %v4236_v17  ;;  %v4258_v27 = vsub.f32 %v1570_v55, %v4238_v28  ;;  %2754 = vmatprep.subr.mxu0 %v4238_v28  ;;  %v5017_v21 = vand.u32 4294901760, %v4248_v1 }
  0xc6   : > { %2792 = vmatprep.subr.mxu1 %v1902_v38  ;;  %v1797_v47 = vand.u32 4294901760, %v1796_v56  ;;  %v4268_v38 = vsub.f32 %v1554_v14, %v4250_v41  ;;  %5299 = vst [vmem:[#allocation34_spill] sm:$0xff] %v4270_v16  ;;  %2755 = vmatpush3.msra.mxu0 %v4250_v41  ;;  %v4288_v56 = vsub.f32 %v1553_v30, %v4270_v16  ;;  %v1551_v30 = vld [vmem:[%s4919_s3 + $0x18] sm:$0xff] }
  0xc7   : > { %5296 = vst [vmem:[#allocation31_spill] sm:$0xff] %v4258_v27  ;;  %2793 = vmatpush3.msra.mxu1 %v1790_v35  ;;  %v1915_v55 = vsub.f32 %v4236_v17, %v5015_v9  ;;  %v5021_v50 = vand.u32 4294901760, %v4258_v27  ;;  %v4280_v35 = vand.u32 4294901760, %v1568_v18  ;;  %2756 = vmatprep.subr.mxu0 %v4260_v4  ;;  %v1803_v14 = vsub.f32 %v4248_v1, %v5017_v21 }
  0xc8   : > { %5298 = vst [vmem:[#allocation33_spill] sm:$0xff] %v4268_v38  ;;  %2794 = vmatprep.subr.mxu1 %v1909_v13  ;;  %v5024_v13 = vand.u32 4294901760, %v4268_v38  ;;  %5302 = vst [vmem:[#allocation37_spill] sm:$0xff] %v4288_v56  ;;  %v4290_v9 = vand.u32 4294901760, %v1552_v24  ;;  %2757 = vmatpush3.msra.mxu0 %v4270_v16  ;;  %v5027_v21 = vand.u32 4294901760, %v4278_v7  ;;  %v5032_v8 = vand.u32 4294901760, %v4288_v56 }
  0xc9   : > { %5301 = vst [vmem:[#allocation36_spill] sm:$0xff] %v4280_v35  ;;  %2795 = vmatpush3.msra.mxu1 %v1797_v47  ;;  %v1916_v43 = vand.u32 4294901760, %v1915_v55  ;;  %v1922_v47 = vsub.f32 %v4258_v27, %v5021_v50  ;;  %v4301_v29 = vsub.f32 %v1568_v18, %v4280_v35  ;;  %2758 = vmatprep.subr.mxu0 %v4280_v35  ;;  %v1804_v22 = vand.u32 4294901760, %v1803_v14  ;;  %v1566_v18 = vld [vmem:[%s4919_s3 + $0x90] sm:$0xff] }
  0xca   : > { %5303 = vst [vmem:[#allocation38_spill] sm:$0xff] %v4290_v9  ;;  %v1810_v55 = vsub.f32 %v4268_v38, %v5024_v13  ;;  %v4312_v50 = vsub.f32 %v1552_v24, %v4290_v9  ;;  %2759 = vmatpush3.msra.mxu0 %v4290_v9  ;;  %v1929_v14 = vsub.f32 %v4278_v7, %v5027_v21  ;;  %v4322_v13 = vand.u32 4294901760, %v1567_v49  ;;  %v1550_v24 = vld [vmem:[%s4919_s3 + $0x10] sm:$0xff]  ;;  %v1565_v21 = vld [vmem:[%s4919_s3 + $0x88] sm:$0xff] }
  0xcb   : > { %5304 = vst [vmem:[#allocation39_spill] sm:$0xff] %v4301_v29  ;;  %2796 = vmatprep.subr.mxu1 %v1916_v43  ;;  %v1923_v44 = vand.u32 4294901760, %v1922_v47  ;;  %v1817_v42 = vsub.f32 %v4288_v56, %v5032_v8  ;;  %v4331_v47 = vand.u32 4294901760, %v1551_v30  ;;  %v5308_v7 = vand.u32 4294901760, %v4301_v29  ;;  %v1549_v8 = vld [vmem:[%s4919_s3 + $0x8] sm:$0xff] }
  0xcc   : > { %5305 = vst [vmem:[#allocation40_spill] sm:$0xff] %v4312_v50  ;;  %5306 = vst [vmem:[#allocation41_spill] sm:$0xff] %v4322_v13  ;;  %2797 = vmatpush3.msra.mxu1 %v1804_v22  ;;  %v1811_v54 = vand.u32 4294901760, %v1810_v55  ;;  %v1930_v36 = vand.u32 4294901760, %v1929_v14  ;;  %v4340_v22 = vsub.f32 %v1567_v49, %v4322_v13  ;;  %v4342_v55 = vand.u32 4294901760, %v1566_v18  ;;  %2760 = vmatprep.subr.mxu0 %v4322_v13  ;;  %v1564_v49 = vld [vmem:[%s4919_s3 + $0x80] sm:$0xff] }
  0xcd   : > { %5307 = vst [vmem:[#allocation42_spill] sm:$0xff] %v4331_v47  ;;  %2798 = vmatprep.subr.mxu1 %v1923_v44  ;;  %v1936_v38 = vsub.f32 %v4301_v29, %v5308_v7  ;;  %v1818_v43 = vand.u32 4294901760, %v1817_v42  ;;  %v5311_v44 = vand.u32 4294901760, %v4312_v50  ;;  %v4352_v56 = vsub.f32 %v1551_v30, %v4331_v47  ;;  %2761 = vmatpush3.msra.mxu0 %v4331_v47 }
  0xce   : > { %5309 = vst [vmem:[#allocation43_spill] sm:$0xff] %v4340_v22  ;;  %5310 = vst [vmem:[#allocation44_spill] sm:$0xff] %v4342_v55  ;;  %2799 = vmatpush3.msra.mxu1 %v1811_v54  ;;  %v4354_v7 = vand.u32 4294901760, %v1550_v24  ;;  %v5043_v54 = vand.u32 4294901760, %v4340_v22  ;;  %v4362_v42 = vsub.f32 %v1566_v18, %v4342_v55  ;;  %v4364_v27 = vand.u32 4294901760, %v1565_v21  ;;  %2762 = vmatprep.subr.mxu0 %v4342_v55 }
  0xcf   : > { %v1824_v14 = vsub.f32 %v4312_v50, %v5311_v44  ;;  %5312 = vst [vmem:[#allocation45_spill] sm:$0xff] %v4352_v56  ;;  %2800 = vmatprep.subr.mxu1 %v1930_v36  ;;  %v1937_v29 = vand.u32 4294901760, %v1936_v38  ;;  %v5046_v44 = vand.u32 4294901760, %v4352_v56  ;;  %v4371_v1 = vand.u32 4294901760, %v1549_v8 }
  0xd0   : > { %5313 = vst [vmem:[#allocation46_spill] sm:$0xff] %v4354_v7  ;;  %5314 = vst [vmem:[#allocation47_spill] sm:$0xff] %v4362_v42  ;;  %2801 = vmatpush3.msra.mxu1 %v1818_v43  ;;  %v4369_v50 = vsub.f32 %v1550_v24, %v4354_v7  ;;  %2763 = vmatpush3.msra.mxu0 %v4354_v7  ;;  %v1943_v36 = vsub.f32 %v4340_v22, %v5043_v54  ;;  %v5049_v38 = vand.u32 4294901760, %v4362_v42 }
  0xd1   : > { %5315 = vst [vmem:[#allocation48_spill] sm:$0xff] %v4364_v27  ;;  %v1825_v30 = vand.u32 4294901760, %v1824_v14  ;;  %5317 = vst [vmem:[#allocation50_spill] sm:$0xff] %v4371_v1  ;;  %2802 = vmatprep.subr.mxu1 %v1937_v29  ;;  %v4379_v18 = vsub.f32 %v1565_v21, %v4364_v27  ;;  %v4381_v43 = vand.u32 4294901760, %v1564_v49  ;;  %2764 = vmatprep.subr.mxu0 %v4364_v27 }
  0xd2   : > { %5316 = vst [vmem:[#allocation49_spill] sm:$0xff] %v4369_v50  ;;  %v1831_v24 = vsub.f32 %v4352_v56, %v5046_v44  ;;  %v5056_v29 = vand.u32 4294901760, %v4369_v50  ;;  %v4389_v14 = vsub.f32 %v1549_v8, %v4371_v1  ;;  %2765 = vmatpush3.msra.mxu0 %v4371_v1  ;;  %v1944_v54 = vand.u32 4294901760, %v1943_v36  ;;  %v1548_v44 = vld [vmem:[%s4919_s3] sm:$0xff] }
  0xd3   : > { %5318 = vst [vmem:[#allocation51_spill] sm:$0xff] %v4379_v18  ;;  %5319 = vst [vmem:[#allocation52_spill] sm:$0xff] %v4381_v43  ;;  %2803 = vmatpush3.msra.mxu1 %v1825_v30  ;;  %v1950_v21 = vsub.f32 %v4362_v42, %v5049_v38  ;;  %v5059_v22 = vand.u32 4294901760, %v4379_v18  ;;  %v4397_v30 = vsub.f32 %v1564_v49, %v4381_v43  ;;  %2766 = vmatprep.subr.mxu0 %v4381_v43  ;;  %v392_v43 = vlaneseq }
  0xd4   : > { %5320 = vst [vmem:[#allocation53_spill] sm:$0xff] %v4389_v14  ;;  %v1832_v8 = vand.u32 4294901760, %v1831_v24  ;;  %v1838_v36 = vsub.f32 %v4369_v50, %v5056_v29  ;;  %2804 = vmatprep.subr.mxu1 %v1944_v54  ;;  %v5058_v49 = vand.u32 4294901760, %v4389_v14  ;;  %v4411_v27 = vand.u32 4294901760, %v1548_v44 }
  0xd5   : > { %5321 = vst [vmem:[#allocation54_spill] sm:$0xff] %v4397_v30  ;;  %v1951_v56 = vand.u32 4294901760, %v1950_v21  ;;  %v1957_v38 = vsub.f32 %v4379_v18, %v5059_v22  ;;  %v5057_v42 = vand.u32 4294901760, %v4397_v30  ;;  %v393_v47 = vshrl.u32 %v392_v43, 7 }
  0xd6   : > { %2805 = vmatpush3.msra.mxu1 %v1832_v8  ;;  %v1839_v1 = vand.u32 4294901760, %v1838_v36  ;;  %5322 = vst [vmem:[#allocation55_spill] sm:$0xff] %v4411_v27  ;;  %v1845_v29 = vsub.f32 %v4389_v14, %v5058_v49  ;;  %v4420_v21 = vsub.f32 %v1548_v44, %v4411_v27  ;;  %2767 = vmatpush3.msra.mxu0 %v4411_v27 }
  0xd7   : > { %2806 = vmatprep.subr.mxu1 %v1951_v56  ;;  %v1958_v24 = vand.u32 4294901760, %v1957_v38  ;;  %v1964_v54 = vsub.f32 %v4397_v30, %v5057_v42  ;;  %2824 = vmatprep.subr.mxu0 %v4025_v39  ;;  %v394_v9 = vsub.s32 0, %v393_v47  ;;  %v398_v53 = vsub.s32 1, %v393_v47 }
  0xd8   : > { %2807 = vmatpush3.msra.mxu1 %v1839_v1  ;;  %5323 = vst [vmem:[#allocation56_spill] sm:$0xff] %v4420_v21  ;;  %v1846_v8 = vand.u32 4294901760, %v1845_v29  ;;  %v5071_v56 = vand.u32 4294901760, %v4420_v21 }
  0xd9   : > { %2808 = vmatprep.subr.mxu1 %v1958_v24  ;;  %v1965_v36 = vand.u32 4294901760, %v1964_v54  ;;  %v395_v16 = vrot.slane %v333_v37, %v394_v9  ;;  %v399_v32 = vrot.slane %v333_v37, %v398_v53 }
  0xda   : > { %2809 = vmatpush3.msra.mxu1 %v1846_v8  ;;  %v1852_v38 = vsub.f32 %v4420_v21, %v5071_v56 }
  0xdb   : > { %2810 = vmatprep.subr.mxu1 %v1965_v36 }
  0xdc   : > { %v1853_v42 = vand.u32 4294901760, %v1852_v38 }
  0xde   : > { %2811 = vmatpush3.msra.mxu1 %v1853_v42 }
  0xdf   : > { %2868 = vmatprep.subr.mxu1 %v4014_v10 }
 0x115   : > { %v505_v1 = vpop.f32.mrf.mxu0 }
 0x116   : > { %v506_v41 = vadd.f32 %v505_v1, %v395_v16 }
 0x117   : > { %v507_v44 = vpop.f32.mrf.mxu0 }
 0x118   : > { %v770_v24 = vpop.f32.mrf.mxu1  ;;  %v508_v12 = vadd.f32 %v507_v44, %v399_v32 }
 0x119   : > { %v771_v51 = vadd.f32 %v770_v24, %v506_v41 }
 0x11a   : > { %v772_v54 = vpop.f32.mrf.mxu1 }
 0x11b   : > { %v773_v2 = vadd.f32 %v772_v54, %v508_v12 }
 0x126   : > { %v516_v49 = vpop.f32.mrf.mxu0 }
 0x127   : > { %v517_v59 = vadd.f32 %v516_v49, %v395_v16 }
 0x128   : > { %v518_v29 = vpop.f32.mrf.mxu0 }
 0x129   : > { %v519_v15 = vadd.f32 %v518_v29, %v399_v32 }
 0x12c   : > { %v527_v22 = vpop.f32.mrf.mxu0 }
 0x12d   : > { %v528_v61 = vadd.f32 %v527_v22, %v395_v16 }
 0x12e   : > { %v529_v30 = vpop.f32.mrf.mxu0 }
 0x12f   : > { %v530_v33 = vadd.f32 %v529_v30, %v399_v32 }
 0x131   : > { %v777_v39 = vpop.f32.mrf.mxu1 }
 0x132   : > { %v538_v8 = vpop.f32.mrf.mxu0  ;;  %v778_v47 = vadd.f32 %v777_v39, %v517_v59 }
 0x133   : > { %v779_v14 = vpop.f32.mrf.mxu1  ;;  %v539_v49 = vadd.f32 %v538_v8, %v395_v16 }
 0x134   : > { %v540_v18 = vpop.f32.mrf.mxu0  ;;  %v780_v60 = vadd.f32 %v779_v14, %v519_v15 }
 0x135   : > { %v541_v59 = vadd.f32 %v540_v18, %v399_v32 }
 0x136   : > { %v784_v36 = vpop.f32.mrf.mxu1 }
 0x137   : > { %v785_v24 = vadd.f32 %v784_v36, %v528_v61 }
 0x138   : > { %v786_v50 = vpop.f32.mrf.mxu1  ;;  %v928_v27 = vpop.f32.mrf.mxu0 }
 0x139   : > { %v929_v25 = vadd.f32 %v928_v27, %v771_v51 }
 0x13a   : > { %v930_v38 = vpop.f32.mrf.mxu0 }
 0x13b   : > { %v931_v19 = vadd.f32 %v930_v38, %v773_v2 }
 0x13c   : > { %v791_v56 = vpop.f32.mrf.mxu1 }
 0x13e   : > { %v4429_v42 = vpop.f32.mrf.mxu1 }
 0x13f   : > { %v936_v21 = vpop.f32.mrf.mxu0 }
 0x140   : > { %v937_v37 = vadd.f32 %v936_v21, %v778_v47  ;;  %v787_v21 = vadd.f32 %v786_v50, %v530_v33  ;;  %v794_v50 = vadd.f32 %v4429_v42, %v541_v59 }
 0x141   : > { %v938_v7 = vpop.f32.mrf.mxu0 }
 0x142   : > { %v939_v12 = vadd.f32 %v938_v7, %v780_v60 }
 0x144   : > { %v1058_v10 = vpop.f32.mrf.mxu1  ;;  %v944_v13 = vpop.f32.mrf.mxu0 }
 0x145   : > { %v1059_v9 = vadd.f32 %v1058_v10, %v929_v25  ;;  %v945_v39 = vadd.f32 %v944_v13, %v785_v24 }
 0x146   : > { %v1060_v55 = vpop.f32.mrf.mxu1  ;;  %v946_v35 = vpop.f32.mrf.mxu0 }
 0x147   : > { %v1061_v44 = vadd.f32 %v1060_v55, %v931_v19  ;;  %v792_v55 = vadd.f32 %v791_v56, %v539_v49  ;;  %v947_v14 = vadd.f32 %v946_v35, %v787_v21 }
 0x14a   : > { %v1067_v17 = vpop.f32.mrf.mxu1  ;;  %v952_v4 = vpop.f32.mrf.mxu0 }
 0x14b   : > { %v1068_v26 = vadd.f32 %v1067_v17, %v937_v37 }
 0x14c   : > { %v1069_v23 = vpop.f32.mrf.mxu1  ;;  %v4434_v3 = vpop.f32.mrf.mxu0 }
 0x14d   : > { %v1070_v30 = vadd.f32 %v1069_v23, %v939_v12  ;;  %v955_v8 = vadd.f32 %v4434_v3, %v794_v50 }
 0x150   : > { %v1076_v11 = vpop.f32.mrf.mxu1 }
 0x151   : > { %v1077_v16 = vadd.f32 %v1076_v11, %v945_v39 }
 0x152   : > { %v1078_v28 = vpop.f32.mrf.mxu1 }
 0x153   : > { %v1079_v32 = vadd.f32 %v1078_v28, %v947_v14 }
 0x155   : > { %v1085_v6 = vpop.f32.mrf.mxu1 }
 0x157   : > { %v1087_v52 = vpop.f32.mrf.mxu1 }
 0x161   : > { %v1253_v43 = vpop.f32.mrf.mxu0 }
 0x162   : > { %v1254_v1 = vadd.f32 %v1253_v43, %v1059_v9  ;;  %v1088_v9 = vadd.f32 %v1087_v52, %v955_v8 }
 0x163   : > { %v1255_v58 = vpop.f32.mrf.mxu0 }
 0x164   : > { %v1256_v27 = vadd.f32 %v1255_v58, %v1061_v44 }
 0x165   : > { %v1260_v40 = vpop.f32.mrf.mxu0 }
 0x166   : > { %v1261_v10 = vadd.f32 %v1260_v40, %v1068_v26  ;;  %v953_v26 = vadd.f32 %v952_v4, %v792_v55 }
 0x167   : > { %v1262_v53 = vpop.f32.mrf.mxu0 }
 0x168   : > { %v1263_v60 = vadd.f32 %v1262_v53, %v1070_v30  ;;  %v1086_v56 = vadd.f32 %v1085_v6, %v953_v26 }
 0x169   : > { %v1267_v34 = vpop.f32.mrf.mxu0 }
 0x16a   : > { %v1378_v41 = vpop.f32.mrf.mxu1  ;;  %v1268_v40 = vadd.f32 %v1267_v34, %v1077_v16 }
 0x16b   : > { %v4436_v51 = vadd.f32 %v1378_v41, %v1254_v1  ;;  %v1269_v2 = vpop.f32.mrf.mxu0 }
 0x16c   : > { %v1380_v22 = vpop.f32.mrf.mxu1  ;;  %v1270_v4 = vadd.f32 %v1269_v2, %v1079_v32 }
 0x16d   : > { %v1428_v25 = vand.u32 2147483647, %v4436_v51  ;;  %v4439_v15 = vadd.f32 %v1380_v22, %v1256_v27  ;;  %v1274_v29 = vpop.f32.mrf.mxu0  ;;  %v1404_v26 = vmax.f32 %v4436_v51, 0.0  ;;  %vm1412_vm0 = vcmp.ne.f32.partialorder %v4436_v51, %v4436_v51 }
 0x16e   : > { %v1385_v19 = vpop.f32.mrf.mxu1  ;;  %v1275_v43 = vadd.f32 %v1274_v29, %v1086_v56 }
 0x16f   : > { %v1436_v61 = vsub.f32 0.0, %v1428_v25  ;;  %v4441_v17 = vadd.f32 %v1385_v19, %v1261_v10  ;;  %v1429_v58 = vand.u32 2147483647, %v4439_v15  ;;  %v1276_v42 = vpop.f32.mrf.mxu0  ;;  %v1405_v29 = vmax.f32 %v4439_v15, 0.0 }
 0x170   : > { %v1387_v13 = vpop.f32.mrf.mxu1  ;;  %v1277_v3 = vadd.f32 %v1276_v42, %v1088_v9  ;;  %vm1413_vm2 = vcmp.ne.f32.partialorder %v4439_v15, %v4439_v15 }
 0x171   : > { %v1444_v7 = vmul.f32 1.442695, %v1436_v61  ;;  %v1430_v33 = vand.u32 2147483647, %v4441_v17  ;;  %v1437_v23 = vsub.f32 0.0, %v1429_v58  ;;  %v4446_v18 = vadd.f32 %v1387_v13, %v1263_v60 }
 0x172   : > { %v1392_v11 = vpop.f32.mrf.mxu1  ;;  %v1406_v50 = vmax.f32 %v4441_v17, 0.0  ;;  %vm1414_vm5 = vcmp.ne.f32.partialorder %v4441_v17, %v4441_v17 }
 0x173   : > { %3060 = vpow2.f32 %v1444_v7  ;;  %v1438_v35 = vsub.f32 0.0, %v1430_v33  ;;  %v4448_v54 = vadd.f32 %v1392_v11, %v1268_v40  ;;  %v1446_v34 = vmul.f32 1.442695, %v1437_v23 }
 0x174   : > { %v1431_v36 = vand.u32 2147483647, %v4446_v18  ;;  %v1394_v38 = vpop.f32.mrf.mxu1  ;;  %v1407_v56 = vmax.f32 %v4446_v18, 0.0  ;;  %vm1415_vm7 = vcmp.ne.f32.partialorder %v4446_v18, %v4446_v18 }
 0x175   : > { %v1448_v47 = vmul.f32 1.442695, %v1438_v35  ;;  %v1432_v28 = vand.u32 2147483647, %v4448_v54  ;;  %3062 = vpow2.f32 %v1446_v34  ;;  %v4453_v6 = vadd.f32 %v1394_v38, %v1270_v4 }
 0x176   : > { %v1439_v53 = vsub.f32 0.0, %v1431_v36  ;;  %v1399_v37 = vpop.f32.mrf.mxu1  ;;  %v1408_v34 = vmax.f32 %v4448_v54, 0.0  ;;  %vm1416_vm8 = vcmp.ne.f32.partialorder %v4448_v54, %v4448_v54 }
 0x177   : > { %3064 = vpow2.f32 %v1448_v47  ;;  %v1440_v1 = vsub.f32 0.0, %v1432_v28  ;;  %v4455_v44 = vadd.f32 %v1399_v37, %v1275_v43  ;;  %v1433_v49 = vand.u32 2147483647, %v4453_v6 }
 0x178   : > { %v1450_v41 = vmul.f32 1.442695, %v1439_v53  ;;  %v1401_v24 = vpop.f32.mrf.mxu1  ;;  %v1409_v47 = vmax.f32 %v4453_v6, 0.0  ;;  %vm1417_vm11 = vcmp.ne.f32.partialorder %v4453_v6, %v4453_v6 }
 0x179   : > { %v1452_v12 = vmul.f32 1.442695, %v1440_v1  ;;  %v1434_v27 = vand.u32 2147483647, %v4455_v44  ;;  %v1441_v22 = vsub.f32 0.0, %v1433_v49  ;;  %v4459_v52 = vadd.f32 %v1401_v24, %v1277_v3 }
 0x17a   : > { %3066 = vpow2.f32 %v1450_v41  ;;  %v1410_v53 = vmax.f32 %v4455_v44, 0.0  ;;  %vm1418_vm13 = vcmp.ne.f32.partialorder %v4455_v44, %v4455_v44 }
 0x17b   : > { %3068 = vpow2.f32 %v1452_v12  ;;  %v1442_v39 = vsub.f32 0.0, %v1434_v27  ;;  %v1454_v10 = vmul.f32 1.442695, %v1441_v22  ;;  %v1435_v25 = vand.u32 2147483647, %v4459_v52 }
 0x17c   : > { %vm1419_vm15 = vcmp.ne.f32.partialorder %v4459_v52, %v4459_v52 }
 0x17d   : > { %v1456_v2 = vmul.f32 1.442695, %v1442_v39  ;;  %3070 = vpow2.f32 %v1454_v10  ;;  %v1443_v59 = vsub.f32 0.0, %v1435_v25 }
 0x17f   : > { %3072 = vpow2.f32 %v1456_v2  ;;  %v1458_v30 = vmul.f32 1.442695, %v1443_v59 }
 0x180   : > { %v3061_v21 = vpop.eup %3060 }
 0x181   : > { %v1460_v19 = vadd.f32 1.0, %v3061_v21  ;;  %3074 = vpow2.f32 %v1458_v30  ;;  %v1463_v40 = vmul.f32 -0.5, %v3061_v21  ;;  %v1466_v23 = vand.u32 2147483647, %v3061_v21 }
 0x182   : > { %v3063_v55 = vpop.eup %3062 }
 0x183   : > { %3076 = vlog2.f32 %v1460_v19  ;;  %v1469_v61 = vadd.f32 1.0, %v3063_v55  ;;  %v1472_v33 = vmul.f32 -0.5, %v3063_v55  ;;  %v1475_v8 = vand.u32 2147483647, %v3063_v55 }
 0x184   : > { %v3065_v16 = vpop.eup %3064  ;;  %v1464_v38 = vadd.f32 1.0, %v1463_v40  ;;  %vm4483_vm1 = vcmp.lt.f32.partialorder %v1466_v23, 0.0004427343 }
 0x185   : > { %v1478_v14 = vadd.f32 1.0, %v3065_v16  ;;  %3078 = vlog2.f32 %v1469_v61  ;;  %v1481_v11 = vmul.f32 -0.5, %v3065_v16  ;;  %v1484_v4 = vand.u32 2147483647, %v3065_v16 }
 0x186   : > { %v1473_v28 = vadd.f32 1.0, %v1472_v33  ;;  %vm4489_vm3 = vcmp.lt.f32.partialorder %v1475_v8, 0.0004427343  ;;  %v1465_v10 = vmul.f32 %v3061_v21, %v1464_v38 }
 0x187   : > { %v3067_v60 = vpop.eup %3066  ;;  %3080 = vlog2.f32 %v1478_v14  ;;  %v1482_v3 = vadd.f32 1.0, %v1481_v11  ;;  %vm4493_vm4 = vcmp.lt.f32.partialorder %v1484_v4, 0.0004427343 }
 0x188   : > { %v4462_v58 = vpop.eup %3068  ;;  %v1487_v13 = vadd.f32 1.0, %v3067_v60  ;;  %v1490_v43 = vmul.f32 -0.5, %v3067_v60  ;;  %v1493_v41 = vand.u32 2147483647, %v3067_v60  ;;  %v1474_v59 = vmul.f32 %v3063_v55, %v1473_v28 }
 0x189   : > { %v1496_v7 = vadd.f32 1.0, %v4462_v58  ;;  %v1499_v9 = vmul.f32 -0.5, %v4462_v58  ;;  %v1502_v2 = vand.u32 2147483647, %v4462_v58 }
 0x18a   : > { %3082 = vlog2.f32 %v1487_v13  ;;  %v4468_v32 = vpop.eup %3070  ;;  %v1491_v25 = vadd.f32 1.0, %v1490_v43  ;;  %v1483_v13 = vmul.f32 %v3065_v16, %v1482_v3  ;;  %vm4505_vm6 = vcmp.lt.f32.partialorder %v1493_v41, 0.0004427343 }
 0x18b   : > { %3084 = vlog2.f32 %v1496_v7  ;;  %v1505_v36 = vadd.f32 1.0, %v4468_v32  ;;  %v1508_v27 = vmul.f32 -0.5, %v4468_v32  ;;  %v1500_v30 = vadd.f32 1.0, %v1499_v9 }
 0x18c   : > { %v4471_v35 = vpop.eup %3072  ;;  %v1511_v19 = vand.u32 2147483647, %v4468_v32  ;;  %v1492_v4 = vmul.f32 %v3067_v60, %v1491_v25  ;;  %vm4515_vm9 = vcmp.lt.f32.partialorder %v1502_v2, 0.0004427343 }
 0x18d   : > { %v1514_v42 = vadd.f32 1.0, %v4471_v35  ;;  %3086 = vlog2.f32 %v1505_v36  ;;  %v1517_v21 = vmul.f32 -0.5, %v4471_v35  ;;  %v1509_v55 = vadd.f32 1.0, %v1508_v27 }
 0x18e   : > { %v4481_v37 = vpop.eup %3074  ;;  %v1520_v11 = vand.u32 2147483647, %v4471_v35  ;;  %v1501_v43 = vmul.f32 %v4462_v58, %v1500_v30  ;;  %vm4527_vm10 = vcmp.lt.f32.partialorder %v1511_v19, 0.0004427343 }
 0x18f   : > { %3088 = vlog2.f32 %v1514_v42  ;;  %v1523_v22 = vadd.f32 1.0, %v4481_v37  ;;  %v1526_v36 = vmul.f32 -0.5, %v4481_v37  ;;  %v1518_v3 = vadd.f32 1.0, %v1517_v21 }
 0x190   : > { %v3077_v49 = vpop.eup %3076  ;;  %v1510_v58 = vmul.f32 %v4468_v32, %v1509_v55  ;;  %vm4542_vm12 = vcmp.lt.f32.partialorder %v1520_v11, 0.0004427343  ;;  %v1529_v32 = vand.u32 2147483647, %v4481_v37 }
 0x191   : > { %v1462_v39 = vmul.f32 0.6931472, %v3077_v49  ;;  %3090 = vlog2.f32 %v1523_v22  ;;  %v1527_v27 = vadd.f32 1.0, %v1526_v36  ;;  %v1411_v36 = vmax.f32 %v4459_v52, 0.0 }
 0x192   : > { %v3079_v61 = vpop.eup %3078  ;;  %vm1530_vm14 = vcmp.lt.f32.partialorder %v1529_v32, 0.0004427343 }
 0x193   : > { %v1468_v14 = vsel %vm4483_vm1, %v1465_v10, %v1462_v39  ;;  %v1471_v23 = vmul.f32 0.6931472, %v3079_v61 }
 0x194   : > { %v3081_v7 = vpop.eup %3080  ;;  %v1532_v33 = vadd.f32 %v1468_v14, %v1404_v26 }
 0x195   : > { %v1480_v8 = vmul.f32 0.6931472, %v3081_v7  ;;  %v1477_v38 = vsel %vm4489_vm3, %v1474_v59, %v1471_v23 }
 0x196   : > { %v1540_v26 = vsel %vm1412_vm0, %v4436_v51, %v1532_v33  ;;  %v1533_v9 = vadd.f32 %v1477_v38, %v1405_v29 }
 0x197   : > { %v3083_v42 = vpop.eup %3082  ;;  %v4531_v28 = vand.u32 4294901760, %v1540_v26  ;;  %v1486_v1 = vsel %vm4493_vm4, %v1483_v13, %v1480_v8  ;;  %v1519_v13 = vmul.f32 %v4471_v35, %v1518_v3 }
 0x198   : > { %v3085_v51 = vpop.eup %3084  ;;  %v1534_v41 = vadd.f32 %v1486_v1, %v1406_v50  ;;  %v1489_v49 = vmul.f32 0.6931472, %v3083_v42  ;;  %v1541_v50 = vsel %vm1413_vm2, %v4439_v15, %v1533_v9 }
 0x199   : > { %5336 = vst [vmem:[#allocation57_spill] sm:$0xff] %v4531_v28  ;;  %v4547_v29 = vsub.f32 %v1540_v26, %v4531_v28  ;;  %v1498_v12 = vmul.f32 0.6931472, %v3085_v51  ;;  %v4558_v39 = vand.u32 4294901760, %v1541_v50 }
 0x19a   : > { %v1495_v22 = vsel %vm4505_vm6, %v1492_v4, %v1489_v49  ;;  %v1542_v10 = vsel %vm1414_vm5, %v4441_v17, %v1534_v41  ;;  %v3087_v25 = vpop.eup %3086 }
 0x19b   : > { %v5149_v2 = vand.u32 4294901760, %v4547_v29  ;;  %v1535_v15 = vadd.f32 %v1495_v22, %v1407_v56  ;;  %v1504_v59 = vsel %vm4515_vm9, %v1501_v43, %v1498_v12  ;;  %v4569_v30 = vand.u32 4294901760, %v1542_v10  ;;  %1968 = vmatprep.mubr.f32.mxu1 %v4558_v39 }
 0x19c   : > { %v3089_v19 = vpop.eup %3088  ;;  %v1536_v61 = vadd.f32 %v1504_v59, %v1408_v34  ;;  %v1507_v14 = vmul.f32 0.6931472, %v3087_v25  ;;  %v4576_v17 = vsub.f32 %v1541_v50, %v4558_v39  ;;  %v1528_v56 = vmul.f32 %v4481_v37, %v1527_v27  ;;  %1970 = vmatmul.mubr.f32.vlgmr.msra.gmra.mxu1 %v4531_v28  ;;  %v5345_v50 = vld [vmem:[#allocation5_spill] sm:$0xff]  ;;  %v5347_v25 = vld [vmem:[#allocation20_spill] sm:$0xff] }
 0x19d   : > { %5339 = vst [vmem:[#allocation58_spill] sm:$0xff] %v4569_v30  ;;  %v1516_v40 = vmul.f32 0.6931472, %v3089_v19  ;;  %v1543_v21 = vsel %vm1415_vm7, %v4446_v18, %v1535_v15  ;;  %v4585_v34 = vsub.f32 %v1542_v10, %v4569_v30  ;;  %2869 = vmatpush3.msra.mxu1 %v4019_v57  ;;  %v1691_v11 = vsub.f32 %v4547_v29, %v5149_v2  ;;  %v5348_v15 = vld [vmem:[#allocation14_spill] sm:$0xff]  ;;  %v5383_v2 = vld [vmem:[#allocation37_spill] sm:$0xff] }
 0x19e   : > { %v1513_v35 = vsel %vm4527_vm10, %v1510_v58, %v1507_v14  ;;  %v4590_v7 = vand.u32 4294901760, %v1543_v21  ;;  %v1684_v33 = vand.u32 4294901760, %v4576_v17  ;;  %v1544_v37 = vsel %vm1416_vm8, %v4448_v54, %v1536_v61  ;;  %v3091_v23 = vpop.eup %3090  ;;  %2870 = vmatprep.subr.mxu1 %v4027_v31  ;;  %v5349_v14 = vld [vmem:[#allocation6_spill] sm:$0xff] }
 0x19f   : > { %v1537_v18 = vadd.f32 %v1513_v35, %v1409_v47  ;;  %v1522_v55 = vsel %vm4542_vm12, %v1519_v13, %v1516_v40  ;;  %v4605_v8 = vand.u32 4294901760, %v1544_v37  ;;  %v1525_v16 = vmul.f32 0.6931472, %v3091_v23  ;;  %2871 = vmatpush3.msra.mxu1 %v4036_v45  ;;  %v5350_v13 = vld [vmem:[#allocation16_spill] sm:$0xff]  ;;  %v5352_v35 = vld [vmem:[#allocation19_spill] sm:$0xff] }
 0x1a0   : > { %5340 = vst [vmem:[#allocation59_spill] sm:$0xff] %v4590_v7  ;;  %v1538_v4 = vadd.f32 %v1522_v55, %v1410_v53  ;;  %1975 = vmatprep.mubr.f32.mxu1 %v4590_v7  ;;  %v1685_v54 = vsub.f32 %v4576_v17, %v1684_v33  ;;  %v4615_v47 = vsub.f32 %v1543_v21, %v4590_v7  ;;  %v5147_v26 = vand.u32 4294901760, %v4585_v34  ;;  %v5351_v21 = vld [vmem:[#allocation22_spill] sm:$0xff]  ;;  %v5354_v55 = vld [vmem:[#allocation23_spill] sm:$0xff] }
 0x1a1   : > { %5341 = vst [vmem:[#allocation60_spill] sm:$0xff] %v4605_v8  ;;  %2872 = vmatprep.subr.mxu1 %v4046_v63  ;;  %1977 = vmatmul.mubr.f32.gmra.mxu1 %v4569_v30  ;;  %v1545_v53 = vsel %vm1417_vm11, %v4453_v6, %v1537_v18  ;;  %v1531_v38 = vsel %vm1530_vm14, %v1528_v56, %v1525_v16  ;;  %v1692_v1 = vand.u32 4294901760, %v1691_v11  ;;  %v5353_v18 = vld [vmem:[#allocation7_spill] sm:$0xff]  ;;  %v5355_v11 = vld [vmem:[#allocation8_spill] sm:$0xff]  ;;  %v5390_v28 = vand.u32 4294901760, %v4547_v29 }
 0x1a2   : > { %2873 = vmatpush3.msra.mxu1 %v4056_v0  ;;  %v1686_v43 = vand.u32 4294901760, %v1685_v54  ;;  %v4626_v60 = vand.u32 4294901760, %v1545_v53  ;;  %v5148_v42 = vand.u32 4294901760, %v4615_v47  ;;  %v1539_v9 = vadd.f32 %v1531_v38, %v1411_v36  ;;  %v5357_v54 = vld [vmem:[#allocation9_spill] sm:$0xff]  ;;  %v5358_v36 = vld [vmem:[#allocation27_spill] sm:$0xff] }
 0x1a3   : > { %2874 = vmatprep.subr.mxu1 %v4069_v20  ;;  %v1546_v6 = vsel %vm1418_vm13, %v4455_v44, %v1538_v4  ;;  %v4644_v41 = vsub.f32 %v1544_v37, %v4605_v8  ;;  %v1706_v12 = vsub.f32 %v4585_v34, %v5147_v26  ;;  %v5356_v4 = vld [vmem:[#allocation25_spill] sm:$0xff]  ;;  %v5381_v26 = vld [vmem:[#allocation35_spill] sm:$0xff] }
 0x1a4   : > { %5342 = vst [vmem:[#allocation61_spill] sm:$0xff] %v4626_v60  ;;  %2875 = vmatpush3.msra.mxu1 %v4082_v48  ;;  %1687 = vmatprep.mubr.f32.mxu0 %v1686_v43  ;;  %v1700_v3 = vsub.f32 %v4615_v47, %v5148_v42  ;;  %v4641_v51 = vsub.f32 %v1545_v53, %v4626_v60  ;;  %v4649_v49 = vand.u32 4294901760, %v1546_v6  ;;  %v5359_v43 = vld [vmem:[#allocation28_spill] sm:$0xff]  ;;  %v5388_v30 = vld [vmem:[#allocation55_spill] sm:$0xff] }
 0x1a5   : > { %1982 = vmatprep.mubr.f32.mxu1 %v4626_v60  ;;  %2876 = vmatprep.subr.mxu1 %v4114_v46  ;;  %v1547_v44 = vsel %vm1419_vm15, %v4459_v52, %v1539_v9  ;;  %v5346_v52 = vld [vmem:[#allocation11_spill] sm:$0xff]  ;;  %v5145_v32 = vand.u32 4294901760, %v4644_v41  ;;  %v1707_v19 = vand.u32 4294901760, %v1706_v12  ;;  %v5360_v9 = vld [vmem:[#allocation12_spill] sm:$0xff] }
 0x1a6   : > { %5343 = vst [vmem:[#allocation62_spill] sm:$0xff] %v4649_v49  ;;  %1693 = vmatmul.mubr.f32.vlgmr.msra.gmra.mxu0 %v1692_v1  ;;  %1984 = vmatmul.mubr.f32.gmra.mxu1 %v4605_v8  ;;  %v1701_v58 = vand.u32 4294901760, %v1700_v3  ;;  %v4652_v24 = vand.u32 4294901760, %v1547_v44  ;;  %v5146_v27 = vand.u32 4294901760, %v4641_v51  ;;  %v4672_v59 = vsub.f32 %v1546_v6, %v4649_v49  ;;  %v5362_v6 = vld [vmem:[#allocation3_spill] sm:$0xff]  ;;  %v5363_v1 = vld [vmem:[#allocation30_spill] sm:$0xff] }
 0x1a7   : > { %2825 = vmatpush3.msra.mxu0 %v4034_v5  ;;  %2877 = vmatpush3.msra.mxu1 %v4123_v62  ;;  %v1721_v56 = vsub.f32 %v4644_v41, %v5145_v32  ;;  %v5364_v3 = vld [vmem:[#allocation17_spill] sm:$0xff]  ;;  %v5366_v12 = vld [vmem:[#allocation32_spill] sm:$0xff]  ;;  %v5389_v7 = vld [vmem:[#allocation43_spill] sm:$0xff] }
 0x1a8   : > { %5344 = vst [vmem:[#allocation63_spill] sm:$0xff] %v4652_v24  ;;  %2826 = vmatprep.subr.mxu0 %v5345_v50  ;;  %2878 = vmatprep.subr.mxu1 %v5346_v52  ;;  %v1715_v22 = vsub.f32 %v4641_v51, %v5146_v27  ;;  %v4667_v10 = vsub.f32 %v1547_v44, %v4652_v24  ;;  %v5143_v23 = vand.u32 4294901760, %v4672_v59  ;;  %v5378_v32 = vld [vmem:[#allocation44_spill] sm:$0xff]  ;;  %v5380_v27 = vld [vmem:[#allocation46_spill] sm:$0xff] }
 0x1a9   : > { %2827 = vmatpush3.msra.mxu0 %v5347_v25  ;;  %2879 = vmatpush3.msra.mxu1 %v5348_v15  ;;  %v1722_v16 = vand.u32 4294901760, %v1721_v56  ;;  %v5370_v56 = vld [vmem:[#allocation36_spill] sm:$0xff] }
 0x1aa   : > { %1702 = vmatprep.mubr.f32.mxu0 %v1701_v58  ;;  %1989 = vmatprep.mubr.f32.mxu1 %v4652_v24  ;;  %v5144_v61 = vand.u32 4294901760, %v4667_v10  ;;  %v1716_v40 = vand.u32 4294901760, %v1715_v22  ;;  %v1736_v38 = vsub.f32 %v4672_v59, %v5143_v23  ;;  %v5365_v58 = vld [vmem:[#allocation21_spill] sm:$0xff]  ;;  %v5367_v22 = vld [vmem:[#allocation34_spill] sm:$0xff]  ;;  %v5382_v42 = vld [vmem:[#allocation48_spill] sm:$0xff] }
 0x1ab   : > { %2828 = vmatprep.subr.mxu0 %v5349_v14  ;;  %2880 = vmatprep.subr.mxu1 %v5350_v13  ;;  %v5375_v23 = vld [vmem:[#allocation29_spill] sm:$0xff]  ;;  %v5385_v24 = vld [vmem:[#allocation39_spill] sm:$0xff]  ;;  %v5386_v8 = vld [vmem:[#allocation52_spill] sm:$0xff] }
 0x1ac   : > { %1708 = vmatmul.mubr.f32.gmra.mxu0 %v1707_v19  ;;  %1991 = vmatmul.mubr.f32.gmra.mxu1 %v4649_v49  ;;  %v1730_v37 = vsub.f32 %v4667_v10, %v5144_v61  ;;  %v1737_v44 = vand.u32 4294901760, %v1736_v38  ;;  %v5368_v19 = vld [vmem:[#allocation24_spill] sm:$0xff]  ;;  %v5374_v38 = vld [vmem:[#allocation41_spill] sm:$0xff]  ;;  %v5377_v61 = vld [vmem:[#allocation31_spill] sm:$0xff] }
 0x1ad   : > { %2829 = vmatpush3.msra.mxu0 %v5351_v21  ;;  %2881 = vmatpush3.msra.mxu1 %v5352_v35  ;;  %v5384_v49 = vld [vmem:[#allocation50_spill] sm:$0xff]  ;;  %v5387_v60 = vld [vmem:[#allocation40_spill] sm:$0xff] }
 0x1ae   : > { %2830 = vmatprep.subr.mxu0 %v5353_v18  ;;  %2882 = vmatprep.subr.mxu1 %v5354_v55  ;;  %v1731_v53 = vand.u32 4294901760, %v1730_v37  ;;  %v5371_v37 = vld [vmem:[#allocation13_spill] sm:$0xff] }
 0x1af   : > { %2260 = vmatprep.mubr.f32.mxu1 %v1684_v33  ;;  %2831 = vmatpush3.msra.mxu0 %v5355_v11  ;;  %v5361_v33 = vld [vmem:[#allocation15_spill] sm:$0xff] }
 0x1b0   : > { %2883 = vmatpush3.msra.mxu1 %v5356_v4  ;;  %1717 = vmatprep.mubr.f32.mxu0 %v1716_v40  ;;  %v5369_v40 = vld [vmem:[#allocation10_spill] sm:$0xff] }
 0x1b1   : > { %2832 = vmatprep.subr.mxu0 %v5357_v54  ;;  %2884 = vmatprep.subr.mxu1 %v5358_v36 }
 0x1b2   : > { %1723 = vmatmul.mubr.f32.gmra.mxu0 %v1722_v16  ;;  %2885 = vmatpush3.msra.mxu1 %v5359_v43  ;;  %v5372_v16 = vld [vmem:[#allocation38_spill] sm:$0xff] }
 0x1b3   : > { %2833 = vmatpush3.msra.mxu0 %v5360_v9  ;;  %2886 = vmatprep.subr.mxu1 %v5361_v33 }
 0x1b4   : > { %2834 = vmatprep.subr.mxu0 %v5362_v6  ;;  %2887 = vmatpush3.msra.mxu1 %v5363_v1 }
 0x1b5   : > { %2835 = vmatpush3.msra.mxu0 %v5364_v3  ;;  %1732 = vmatprep.mubr.f32.mxu0 %v1731_v53  ;;  %v5373_v53 = vld [vmem:[#allocation26_spill] sm:$0xff] }
 0x1b6   : > { %2836 = vmatprep.subr.mxu0 %v5365_v58  ;;  %2888 = vmatprep.subr.mxu1 %v5366_v12 }
 0x1b7   : > { %1738 = vmatmul.mubr.f32.gmra.mxu0 %v1737_v44  ;;  %2889 = vmatpush3.msra.mxu1 %v5367_v22  ;;  %v5376_v44 = vld [vmem:[#allocation42_spill] sm:$0xff] }
 0x1b8   : > { %2837 = vmatpush3.msra.mxu0 %v5368_v19  ;;  %2126 = vmatprep.mubr.f32.mxu0 %v4576_v17  ;;  %v5379_v17 = vld [vmem:[#allocation33_spill] sm:$0xff] }
 0x1b9   : > { %2838 = vmatprep.subr.mxu0 %v5369_v40  ;;  %2890 = vmatprep.subr.mxu1 %v5370_v56 }
 0x1ba   : > { %2839 = vmatpush3.msra.mxu0 %v5371_v37  ;;  %2891 = vmatpush3.msra.mxu1 %v5372_v16 }
 0x1bb   : > { %2840 = vmatprep.subr.mxu0 %v5373_v53  ;;  %2892 = vmatprep.subr.mxu1 %v5374_v38 }
 0x1bc   : > { %2841 = vmatpush3.msra.mxu0 %v5375_v23  ;;  %2893 = vmatpush3.msra.mxu1 %v5376_v44 }
 0x1bd   : > { %2842 = vmatprep.subr.mxu0 %v5377_v61  ;;  %2894 = vmatprep.subr.mxu1 %v5378_v32 }
 0x1be   : > { %2843 = vmatpush3.msra.mxu0 %v5379_v17  ;;  %2895 = vmatpush3.msra.mxu1 %v5380_v27 }
 0x1bf   : > { %2844 = vmatprep.subr.mxu0 %v5381_v26  ;;  %2896 = vmatprep.subr.mxu1 %v5382_v42  ;;  %v5391_v26 = vld [vmem:[#allocation4_spill] sm:$0xff]  ;;  %v5392_v42 = vld [vmem:[#allocation45_spill] sm:$0xff] }
 0x1c0   : > { %2845 = vmatpush3.msra.mxu0 %v5383_v2  ;;  %2897 = vmatpush3.msra.mxu1 %v5384_v49  ;;  %v5393_v2 = vand.u32 4294901760, %v4615_v47 }
 0x1c1   : > { %2846 = vmatprep.subr.mxu0 %v5385_v24  ;;  %2898 = vmatprep.subr.mxu1 %v5386_v8  ;;  %v5394_v24 = vld [vmem:[#allocation47_spill] sm:$0xff] }
 0x1c2   : > { %2847 = vmatpush3.msra.mxu0 %v5387_v60  ;;  %2899 = vmatpush3.msra.mxu1 %v5388_v30  ;;  %v5395_v60 = vld [vmem:[#allocation49_spill] sm:$0xff] }
 0x1c3   : > { %2848 = vmatprep.subr.mxu0 %v5389_v7  ;;  %2264 = vmatmul.mubr.f32.vlgmr.msra.gmra.mxu1 %v5390_v28  ;;  %v5396_v7 = vld [vmem:[#allocation51_spill] sm:$0xff]  ;;  %v5397_v28 = vand.u32 4294901760, %v4585_v34 }
 0x1c4   : > { %2956 = vmatprep.subr.mxu1 %v5391_v26  ;;  %2849 = vmatpush3.msra.mxu0 %v5392_v42  ;;  %v5398_v26 = vld [vmem:[#allocation53_spill] sm:$0xff] }
 0x1c5   : > { %2271 = vmatprep.mubr.f32.mxu1 %v5393_v2  ;;  %2957 = vmatpush3.msra.mxu1 %v4019_v57  ;;  %v5399_v2 = vand.u32 4294901760, %v4641_v51  ;;  %v5400_v57 = vld [vmem:[#allocation54_spill] sm:$0xff] }
 0x1c6   : > { %2850 = vmatprep.subr.mxu0 %v5394_v24  ;;  %2958 = vmatprep.subr.mxu1 %v4027_v31  ;;  %v5401_v31 = vld [vmem:[#allocation56_spill] sm:$0xff] }
 0x1c7   : > { %2851 = vmatpush3.msra.mxu0 %v5395_v60  ;;  %2959 = vmatpush3.msra.mxu1 %v4036_v45  ;;  %v5402_v45 = vand.u32 4294901760, %v4644_v41 }
 0x1c8   : > { %2852 = vmatprep.subr.mxu0 %v5396_v7  ;;  %2275 = vmatmul.mubr.f32.gmra.mxu1 %v5397_v28 }
 0x1c9   : > { %2960 = vmatprep.subr.mxu1 %v4046_v63  ;;  %2853 = vmatpush3.msra.mxu0 %v5398_v26  ;;  %v5403_v63 = vld [vmem:[#allocation18_spill] sm:$0xff] }
 0x1ca   : > { %2282 = vmatprep.mubr.f32.mxu1 %v5399_v2  ;;  %2961 = vmatpush3.msra.mxu1 %v4056_v0  ;;  %v5404_v28 = vand.u32 4294901760, %v5403_v63  ;;  %v5405_v0 = vand.u32 4294901760, %v4667_v10 }
 0x1cb   : > { %2854 = vmatprep.subr.mxu0 %v5400_v57  ;;  %2962 = vmatprep.subr.mxu1 %v4069_v20  ;;  %v5406_v20 = vand.u32 4294901760, %v4034_v5  ;;  %v5410_v5 = vand.u32 4294901760, %v5349_v14  ;;  %v5421_v14 = vand.u32 4294901760, %v5371_v37 }
 0x1cc   : > { %2855 = vmatpush3.msra.mxu0 %v5401_v31  ;;  %2963 = vmatpush3.msra.mxu1 %v4082_v48  ;;  %v5407_v48 = vand.u32 4294901760, %v5345_v50  ;;  %v5415_v50 = vand.u32 4294901760, %v5360_v9  ;;  %v5438_v9 = vand.u32 4294901760, %v5392_v42  ;;  %v5446_v42 = vand.u32 4294901760, %v5400_v57 }
 0x1cd   : > { %2129 = vmatmul.mubr.f32.vlgmr.msra.gmra.mxu0 %v4547_v29  ;;  %2286 = vmatmul.mubr.f32.gmra.mxu1 %v5402_v45  ;;  %v5408_v29 = vand.u32 4294901760, %v5347_v25  ;;  %v5417_v25 = vand.u32 4294901760, %v5364_v3  ;;  %v5445_v3 = vld [vmem:[#allocation61_spill] sm:$0xff] }
 0x1ce   : > { %2912 = vmatprep.subr.mxu0 %v5404_v28  ;;  %2964 = vmatprep.subr.mxu1 %v4114_v46  ;;  %v5409_v46 = vand.u32 4294901760, %v4672_v59 }
 0x1cf   : > { %2135 = vmatprep.mubr.f32.mxu0 %v4615_v47  ;;  %2293 = vmatprep.mubr.f32.mxu1 %v5405_v0  ;;  %v5412_v47 = vand.u32 4294901760, %v5353_v18 }
 0x1d0   : > { %2913 = vmatpush3.msra.mxu0 %v5406_v20  ;;  %2965 = vmatpush3.msra.mxu1 %v4123_v62  ;;  %v5411_v62 = vand.u32 4294901760, %v5351_v21  ;;  %v5425_v21 = vand.u32 4294901760, %v5379_v17 }
 0x1d1   : > { %2914 = vmatprep.subr.mxu0 %v5407_v48  ;;  %2966 = vmatprep.subr.mxu1 %v5346_v52  ;;  %v5416_v52 = vand.u32 4294901760, %v5362_v6  ;;  %v5442_v6 = vand.u32 4294901760, %v5396_v7  ;;  %v5449_v7 = vld [vmem:[#allocation63_spill] sm:$0xff] }
 0x1d2   : > { %2915 = vmatpush3.msra.mxu0 %v5408_v29  ;;  %2967 = vmatpush3.msra.mxu1 %v5348_v15  ;;  %v5420_v15 = vand.u32 4294901760, %v5369_v40 }
 0x1d3   : > { %2138 = vmatmul.mubr.f32.gmra.mxu0 %v4585_v34  ;;  %2297 = vmatmul.mubr.f32.gmra.mxu1 %v5409_v46  ;;  %v5413_v34 = vand.u32 4294901760, %v5355_v11  ;;  %v5429_v11 = vld [vmem:[#allocation37_spill] sm:$0xff] }
 0x1d4   : > { %2916 = vmatprep.subr.mxu0 %v5410_v5  ;;  %2968 = vmatprep.subr.mxu1 %v5350_v13  ;;  %v5423_v13 = vand.u32 4294901760, %v5375_v23  ;;  %v5430_v23 = vand.u32 4294901760, %v5429_v11 }
 0x1d5   : > { %2144 = vmatprep.mubr.f32.mxu0 %v4641_v51  ;;  %2917 = vmatpush3.msra.mxu0 %v5411_v62  ;;  %v5414_v51 = vand.u32 4294901760, %v5357_v54 }
 0x1d6   : > { %2969 = vmatpush3.msra.mxu1 %v5352_v35  ;;  %2588 = vmatprep.mubr.f32.mxu1 %v4558_v39  ;;  %v5426_v35 = vld [vmem:[#allocation35_spill] sm:$0xff] }
 0x1d7   : > { %2918 = vmatprep.subr.mxu0 %v5412_v47  ;;  %2970 = vmatprep.subr.mxu1 %v5354_v55  ;;  %v5427_v18 = vand.u32 4294901760, %v5426_v35  ;;  %v5428_v55 = vld [vmem:[#allocation48_spill] sm:$0xff] }
 0x1d8   : > { %2919 = vmatpush3.msra.mxu0 %v5413_v34  ;;  %2971 = vmatpush3.msra.mxu1 %v5356_v4  ;;  %v5431_v4 = vld [vmem:[#allocation39_spill] sm:$0xff] }
 0x1d9   : > { %2147 = vmatmul.mubr.f32.gmra.mxu0 %v4644_v41  ;;  %2920 = vmatprep.subr.mxu0 %v5414_v51  ;;  %v5418_v41 = vand.u32 4294901760, %v5365_v58  ;;  %v5447_v58 = vand.u32 4294901760, %v5401_v31 }
 0x1da   : > { %2972 = vmatprep.subr.mxu1 %v5358_v36  ;;  %2153 = vmatprep.mubr.f32.mxu0 %v4667_v10  ;;  %v5419_v10 = vand.u32 4294901760, %v5368_v19 }
 0x1db   : > { %2921 = vmatpush3.msra.mxu0 %v5415_v50  ;;  %2973 = vmatpush3.msra.mxu1 %v5359_v43  ;;  %v5437_v43 = vld [vmem:[#allocation57_spill] sm:$0xff] }
 0x1dc   : > { %2922 = vmatprep.subr.mxu0 %v5416_v52  ;;  %2974 = vmatprep.subr.mxu1 %v5361_v33  ;;  %v5439_v33 = vld [vmem:[#allocation59_spill] sm:$0xff] }
 0x1dd   : > { %2923 = vmatpush3.msra.mxu0 %v5417_v25  ;;  %2975 = vmatpush3.msra.mxu1 %v5363_v1  ;;  %v5444_v1 = vand.u32 4294901760, %v5398_v26  ;;  %v2733_v52 = vld [vmem:[%s4920_s4] ss:$0 sm:$0xff] }
 0x1de   : > { %2156 = vmatmul.mubr.f32.gmra.mxu0 %v4672_v59  ;;  %2924 = vmatprep.subr.mxu0 %v5418_v41  ;;  %v5422_v59 = vand.u32 4294901760, %v5373_v53 }
 0x1df   : > { %2976 = vmatprep.subr.mxu1 %v5366_v12  ;;  %2925 = vmatpush3.msra.mxu0 %v5419_v10 }
 0x1e0   : > { %2463 = vmatprep.mubr.f32.mxu0 %v4558_v39  ;;  %2977 = vmatpush3.msra.mxu1 %v5367_v22  ;;  %v5424_v39 = vand.u32 4294901760, %v5377_v61  ;;  %v5432_v61 = vand.u32 4294901760, %v5431_v4 }
 0x1e1   : > { %2926 = vmatprep.subr.mxu0 %v5420_v15  ;;  %2978 = vmatprep.subr.mxu1 %v5370_v56 }
 0x1e2   : > { %2927 = vmatpush3.msra.mxu0 %v5421_v14  ;;  %2979 = vmatpush3.msra.mxu1 %v5372_v16 }
 0x1e3   : > { %2928 = vmatprep.subr.mxu0 %v5422_v59  ;;  %2980 = vmatprep.subr.mxu1 %v5374_v38 }
 0x1e4   : > { %2929 = vmatpush3.msra.mxu0 %v5423_v13  ;;  %2981 = vmatpush3.msra.mxu1 %v5376_v44 }
 0x1e5   : > { %2930 = vmatprep.subr.mxu0 %v5424_v39  ;;  %2982 = vmatprep.subr.mxu1 %v5378_v32  ;;  %v5433_v32 = vld [vmem:[#allocation40_spill] sm:$0xff] }
 0x1e6   : > { %2931 = vmatpush3.msra.mxu0 %v5425_v21  ;;  %2983 = vmatpush3.msra.mxu1 %v5380_v27  ;;  %v5434_v54 = vand.u32 4294901760, %v5433_v32  ;;  %v5435_v27 = vld [vmem:[#allocation43_spill] sm:$0xff] }
 0x1e7   : > { %2932 = vmatprep.subr.mxu0 %v5427_v18  ;;  %2984 = vmatprep.subr.mxu1 %v5428_v55  ;;  %v5436_v36 = vand.u32 4294901760, %v5435_v27 }
 0x1e8   : > { %2933 = vmatpush3.msra.mxu0 %v5430_v23  ;;  %2985 = vmatpush3.msra.mxu1 %v5384_v49  ;;  %v5440_v49 = vand.u32 4294901760, %v5394_v24  ;;  %v5450_v24 = vld [vmem:[#allocation62_spill] sm:$0xff] }
 0x1e9   : > { %2934 = vmatprep.subr.mxu0 %v5432_v61  ;;  %2986 = vmatprep.subr.mxu1 %v5386_v8  ;;  %v5441_v8 = vand.u32 4294901760, %v5395_v60  ;;  %v5448_v60 = vld [vmem:[#allocation60_spill] sm:$0xff] }
 0x1ea   : > { %2935 = vmatpush3.msra.mxu0 %v5434_v54  ;;  %2987 = vmatpush3.msra.mxu1 %v5388_v30  ;;  %v5443_v30 = vld [vmem:[#allocation58_spill] sm:$0xff] }
 0x1eb   : > { %2936 = vmatprep.subr.mxu0 %v5436_v36  ;;  %2590 = vmatmul.mubr.f32.vlgmr.msra.gmra.mxu1 %v5437_v43 }
 0x1ec   : > { %2937 = vmatpush3.msra.mxu0 %v5438_v9  ;;  %2595 = vmatprep.mubr.f32.mxu1 %v5439_v33 }
 0x1ed   : > { %2938 = vmatprep.subr.mxu0 %v5440_v49 }
 0x1ee   : > { %2939 = vmatpush3.msra.mxu0 %v5441_v8 }
 0x1ef   : > { %2940 = vmatprep.subr.mxu0 %v5442_v6  ;;  %2597 = vmatmul.mubr.f32.gmra.mxu1 %v5443_v30 }
 0x1f0   : > { %2941 = vmatpush3.msra.mxu0 %v5444_v1  ;;  %2602 = vmatprep.mubr.f32.mxu1 %v5445_v3 }
 0x1f1   : > { %2942 = vmatprep.subr.mxu0 %v5446_v42 }
 0x1f2   : > { %2943 = vmatpush3.msra.mxu0 %v5447_v58 }
 0x1f3   : > { %2465 = vmatmul.mubr.f32.vlgmr.msra.gmra.mxu0 %v5437_v43  ;;  %2604 = vmatmul.mubr.f32.gmra.mxu1 %v5448_v60 }
 0x1f4   : > { %2470 = vmatprep.mubr.f32.mxu0 %v5439_v33  ;;  %2609 = vmatprep.mubr.f32.mxu1 %v5449_v7 }
 0x1f7   : > { %2472 = vmatmul.mubr.f32.gmra.mxu0 %v5443_v30  ;;  %2611 = vmatmul.mubr.f32.gmra.mxu1 %v5450_v24 }
 0x1f8   : > { %2477 = vmatprep.mubr.f32.mxu0 %v5445_v3 }
 0x1fb   : > { %2479 = vmatmul.mubr.f32.gmra.mxu0 %v5448_v60 }
 0x1fc   : > { %2484 = vmatprep.mubr.f32.mxu0 %v5449_v7 }
 0x1ff   : > { %2486 = vmatmul.mubr.f32.gmra.mxu0 %v5450_v24 }
 0x25c   : > { %v2812_v12 = vpop.f32.mrf.mxu1 }
 0x25e   : > { %v2813_v22 = vpop.f32.mrf.mxu1 }
 0x25f   : > { %v2814_v39 = vadd.f32 %v2813_v22, %v2812_v12 }
 0x261   : > { %v2815_v19 = vpop.f32.mrf.mxu1 }
 0x263   : > { %v2816_v56 = vpop.f32.mrf.mxu1 }
 0x264   : > { %v2817_v23 = vadd.f32 %v2816_v56, %v2815_v19 }
 0x266   : > { %v2768_v40 = vpop.f32.mrf.mxu0  ;;  %v2818_v16 = vpop.f32.mrf.mxu1 }
 0x268   : > { %v2769_v37 = vpop.f32.mrf.mxu0  ;;  %v2819_v38 = vpop.f32.mrf.mxu1 }
 0x269   : > { %v2770_v50 = vadd.f32 %v2769_v37, %v2768_v40  ;;  %v2820_v30 = vadd.f32 %v2819_v38, %v2818_v16 }
 0x26b   : > { %v1695_v14 = vadd.f32 %v2770_v50, %v2733_v52 }
 0x26c   : > { %v2771_v53 = vpop.f32.mrf.mxu0  ;;  %v4871_v17 = vpop.f32.mrf.mxu1 }
 0x26d   : > { %v1972_v11 = vadd.f32 %v2814_v39, %v1695_v14 }
 0x26e   : > { %v2772_v44 = vpop.f32.mrf.mxu0  ;;  %v2822_v2 = vpop.f32.mrf.mxu1 }
 0x26f   : > { %v2773_v10 = vadd.f32 %v2772_v44, %v2771_v53  ;;  %v2823_v19 = vadd.f32 %v2822_v2, %v4871_v17 }
 0x271   : > { %v1710_v35 = vadd.f32 %v2773_v10, %v2733_v52 }
 0x272   : > { %v2774_v26 = vpop.f32.mrf.mxu0 }
 0x273   : > { %v1979_v27 = vadd.f32 %v2817_v23, %v1710_v35 }
 0x274   : > { %v2775_v57 = vpop.f32.mrf.mxu0 }
 0x275   : > { %v2776_v55 = vadd.f32 %v2775_v57, %v2774_v26 }
 0x277   : > { %v2777_v45 = vpop.f32.mrf.mxu0  ;;  %v1725_v43 = vadd.f32 %v2776_v55, %v2733_v52 }
 0x279   : > { %v2778_v28 = vpop.f32.mrf.mxu0  ;;  %v1986_v24 = vadd.f32 %v2820_v30, %v1725_v43 }
 0x27a   : > { %v2779_v9 = vadd.f32 %v2778_v28, %v2777_v45 }
 0x27c   : > { %v1740_v7 = vadd.f32 %v2779_v9, %v2733_v52 }
 0x283   : > { %v2900_v31 = vpop.f32.mrf.mxu1 }
 0x285   : > { %v2901_v63 = vpop.f32.mrf.mxu1 }
 0x286   : > { %v2902_v33 = vadd.f32 %v2901_v63, %v2900_v31  ;;  %v1993_v31 = vadd.f32 %v2823_v19, %v1740_v7 }
 0x288   : > { %v2903_v0 = vpop.f32.mrf.mxu1 }
 0x28a   : > { %v2904_v48 = vpop.f32.mrf.mxu1 }
 0x28b   : > { %v2905_v58 = vadd.f32 %v2904_v48, %v2903_v0 }
 0x28d   : > { %v2856_v20 = vpop.f32.mrf.mxu0  ;;  %v2906_v46 = vpop.f32.mrf.mxu1 }
 0x28f   : > { %v2857_v29 = vpop.f32.mrf.mxu0  ;;  %v2907_v62 = vpop.f32.mrf.mxu1 }
 0x290   : > { %v2858_v21 = vadd.f32 %v2857_v29, %v2856_v20  ;;  %v2908_v57 = vadd.f32 %v2907_v62, %v2906_v46 }
 0x292   : > { %v2131_v54 = vadd.f32 %v2858_v21, %v1972_v11 }
 0x293   : > { %v2859_v5 = vpop.f32.mrf.mxu0  ;;  %v4873_v34 = vpop.f32.mrf.mxu1 }
 0x294   : > { %v2266_v3 = vadd.f32 %v2902_v33, %v2131_v54 }
 0x295   : > { %v2860_v47 = vpop.f32.mrf.mxu0  ;;  %v4880_v25 = vpop.f32.mrf.mxu1 }
 0x296   : > { %v2861_v4 = vadd.f32 %v2860_v47, %v2859_v5  ;;  %v2911_v5 = vadd.f32 %v4880_v25, %v4873_v34 }
 0x298   : > { %v2140_v49 = vadd.f32 %v2861_v4, %v1979_v27 }
 0x299   : > { %v2862_v51 = vpop.f32.mrf.mxu0 }
 0x29a   : > { %v2277_v56 = vadd.f32 %v2905_v58, %v2140_v49 }
 0x29b   : > { %v2863_v41 = vpop.f32.mrf.mxu0 }
 0x29c   : > { %v2864_v1 = vadd.f32 %v2863_v41, %v2862_v51 }
 0x29e   : > { %v2865_v59 = vpop.f32.mrf.mxu0  ;;  %v2149_v16 = vadd.f32 %v2864_v1, %v1986_v24 }
 0x2a0   : > { %v2866_v61 = vpop.f32.mrf.mxu0  ;;  %v2288_v20 = vadd.f32 %v2908_v57, %v2149_v16 }
 0x2a1   : > { %v2867_v53 = vadd.f32 %v2866_v61, %v2865_v59 }
 0x2a3   : > { %v2158_v28 = vadd.f32 %v2867_v53, %v1993_v31 }
 0x2a5   : > { %v2299_v52 = vadd.f32 %v2911_v5, %v2158_v28 }
 0x2ab   : > { %v2988_v15 = vpop.f32.mrf.mxu1 }
 0x2ad   : > { %v2989_v13 = vpop.f32.mrf.mxu1 }
 0x2ae   : > { %v2990_v12 = vadd.f32 %v2989_v13, %v2988_v15 }
 0x2af   : > { %v2991_v18 = vpop.f32.mrf.mxu1 }
 0x2b1   : > { %v2992_v32 = vpop.f32.mrf.mxu1 }
 0x2b2   : > { %v2993_v45 = vadd.f32 %v2992_v32, %v2991_v18 }
 0x2b3   : > { %v2944_v36 = vpop.f32.mrf.mxu0  ;;  %v2994_v8 = vpop.f32.mrf.mxu1 }
 0x2b5   : > { %v2945_v6 = vpop.f32.mrf.mxu0  ;;  %v2995_v40 = vpop.f32.mrf.mxu1 }
 0x2b6   : > { %v2946_v42 = vadd.f32 %v2945_v6, %v2944_v36  ;;  %v2996_v47 = vadd.f32 %v2995_v40, %v2994_v8 }
 0x2b7   : > { %v2947_v60 = vpop.f32.mrf.mxu0  ;;  %v2997_v2 = vpop.f32.mrf.mxu1 }
 0x2b8   : > { %v2467_v22 = vadd.f32 %v2946_v42, %v2266_v3 }
 0x2b9   : > { %v2948_v37 = vpop.f32.mrf.mxu0  ;;  %v2998_v46 = vpop.f32.mrf.mxu1 }
 0x2ba   : > { %v2592_v38 = vadd.f32 %v2990_v12, %v2467_v22  ;;  %v2949_v44 = vadd.f32 %v2948_v37, %v2947_v60  ;;  %v2999_v10 = vadd.f32 %v2998_v46, %v2997_v2 }
 0x2bb   : > { %v2950_v26 = vpop.f32.mrf.mxu0 }
 0x2bc   : > { %2616 = vst [vmem:[%s4887_s15] sm:$0xff] %v2592_v38  ;;  %v2474_v17 = vadd.f32 %v2949_v44, %v2277_v56 }
 0x2bd   : > { %v2951_v63 = vpop.f32.mrf.mxu0 }
 0x2be   : > { %v2599_v0 = vadd.f32 %v2993_v45, %v2474_v17  ;;  %v2952_v48 = vadd.f32 %v2951_v63, %v2950_v26 }
 0x2bf   : > { %v2953_v29 = vpop.f32.mrf.mxu0 }
 0x2c0   : > { %2617 = vst [vmem:[%s4887_s15 + $0x8] sm:$0xff] %v2599_v0  ;;  %v2481_v51 = vadd.f32 %v2952_v48, %v2288_v20 }
 0x2c1   : > { %v2954_v62 = vpop.f32.mrf.mxu0 }
 0x2c2   : > { %v2606_v50 = vadd.f32 %v2996_v47, %v2481_v51  ;;  %v2955_v41 = vadd.f32 %v2954_v62, %v2953_v29 }
 0x2c4   : > { %2618 = vst [vmem:[%s4887_s15 + $0x10] sm:$0xff] %v2606_v50  ;;  %v2488_v15 = vadd.f32 %v2955_v41, %v2299_v52 }
 0x2c6   : > { %v2613_v14 = vadd.f32 %v2999_v10, %v2488_v15 }
 0x2c8   : > { %2619 = vst [vmem:[%s4887_s15 + $0x18] sm:$0xff] %v2613_v14 }
 0x2c9 PF: > { %s15_s24 = sadd.s32 1, %s3146_s24   ;;  %s5451_s18 = smov %s3126_s19 }
 0x2ca   : > { %p12_p12 = scmp.ge.s32.totalorder %s15_s24, 6   ;;  %s5452_s19 = smov %s3230_s6 }
 0x2cb   : > { %s5453_s20 = smov %s3138_s22  ;;  %s5454_s21 = smov %s3142_s23 }
 0x2cc   : > { %s5455_s22 = smov %s5458_s25  ;;  %s5456_s23 = smov %s5462_s26 }
 0x2cd   :  { %14 = sbr.rel (!%p12_p12) target bundleno = 4 (0x4), region = 115 }

</bundles_post_ra>
